<compile_context>
chip_gen: v7x
topology: tpu7x:2x2x1
jax: 0.10.0
libtpu: 0.0.40
codegen_flags: <defaults>
</compile_context>

<pallas_src>
import functools

import jax
import jax.numpy as jnp
from jax.experimental import pallas as pl
from jax.experimental.pallas import tpu as pltpu

LN_EPS = 1e-5


# ----------------------------------------------------------------------------
# helpers
# ----------------------------------------------------------------------------
def _round_up(x, m):
    return ((x + m - 1) // m) * m


def _pad2(a, rows, cols):
    """Zero-pad a 2-D array up to (rows, cols)."""
    return jnp.pad(a, ((0, rows - a.shape[0]), (0, cols - a.shape[1])))


def _full_spec(shape):
    # Whole-array block (no grid): block_shape == array shape is always legal.
    return pl.BlockSpec(shape, lambda *_: (0,) * len(shape))


def _vmem_limit_bytes():
    """Scoped-VMEM budget derived from the chip instead of a hard-coded 48 MiB.
    ~85% of physical leaves Mosaic scratch headroom: ≈109 MiB on v5e/v6e
    (128 MiB physical), ≈54 MiB on v7x (64 MiB physical)."""
    try:
        cap = int(pltpu.get_tpu_info().vmem_capacity_bytes)
    except Exception:
        cap = 64 * 1024 * 1024          # conservative fallback (v7x physical)
    return int(cap * 0.85)


# ----------------------------------------------------------------------------
# fused Pallas kernel: 3x(GCN+LN+ReLU) -> mean-pool -> relu(fc1) -> fc2
# ----------------------------------------------------------------------------
def fused_gcn_kernel(a_hbm,                      # bf16 Â, left in HBM (pl.ANY)
                     x_ref,
                     w1_ref, b1_ref, g1_ref, be1_ref,
                     w2_ref, b2_ref, g2_ref, be2_ref,
                     w3_ref, b3_ref, g3_ref, be3_ref,
                     p_ref, attr_ref,
                     fc1wh_ref, fc1wa_ref, fc1b_ref,
                     fc2w_ref, fc2b_ref,
                     o_ref,
                     a_vmem, a_sem,              # scratch: single-buffered Â + DMA sem
                     *, hidden_real):
    # Kick off the one-time Â HBM->VMEM DMA; overlap it with layer-1 X@W.
    a_copy = pltpu.make_async_copy(a_hbm, a_vmem, a_sem)
    a_copy.start()

    hpad = w1_ref.shape[1]
    inv_h = 1.0 / hidden_real            # LayerNorm stats over the real hidden width
    # Columns >= hidden_real are zero-padding; mask them out of the variance sum.
    col_mask = jax.lax.broadcasted_iota(jnp.int32, (1, hpad), 1) < hidden_real

    def ln_relu(h, g_ref, be_ref):
        # Two-pass LayerNorm in f32. Padded columns of h are exactly zero, so
        # the plain row-sum gives the unpadded mean; the variance sum masks the
        # padded (0-mu)^2 terms out explicitly (no E[x^2]-E[x]^2 cancellation).
        mu = jnp.sum(h, axis=-1, keepdims=True) * inv_h
        d = h - mu
        var = jnp.sum(jnp.where(col_mask, d * d, 0.0), axis=-1,
                      keepdims=True) * inv_h
        hn = d * jax.lax.rsqrt(var + LN_EPS)
        # gamma/beta are zero in padded columns -> padded columns stay exactly 0.
        out = jnp.maximum(hn * g_ref[...] + be_ref[...], 0.0)
        # Inter-layer activations carried in bf16 (next matmul operand).
        return out.astype(jnp.bfloat16)

    # Layer-1 X@W (bf16 x bf16 -> f32 acc) while Â streams in.
    xw1 = jnp.dot(x_ref[...], w1_ref[...],
                  preferred_element_type=jnp.float32).astype(jnp.bfloat16)

    a_copy.wait()
    a = a_vmem[...]                      # bf16 [Npad, Npad], loaded once, reused 3x

    def aggregate(xw_bf16, b_ref):
        # Â @ (XW) — bf16 MXU operands, f32 accumulation, + bias in f32.
        return jnp.dot(a, xw_bf16, preferred_element_type=jnp.float32) + b_ref[...]

    h1 = ln_relu(aggregate(xw1, b1_ref), g1_ref, be1_ref)
    xw2 = jnp.dot(h1, w2_ref[...],
                  preferred_element_type=jnp.float32).astype(jnp.bfloat16)
    h2 = ln_relu(aggregate(xw2, b2_ref), g2_ref, be2_ref)
    xw3 = jnp.dot(h2, w3_ref[...],
                  preferred_element_type=jnp.float32).astype(jnp.bfloat16)
    h3 = ln_relu(aggregate(xw3, b3_ref), g3_ref, be3_ref)

    # global_mean_pool as a matmul: pooled = P @ H  (bf16 operands, f32 acc).
    pooled = jnp.dot(p_ref[...], h3, preferred_element_type=jnp.float32)

    # Concat-free head: fc1(cat(pooled, attr)) == pooled @ W_h + attr @ W_a + b.
    z = jnp.dot(pooled.astype(jnp.bfloat16), fc1wh_ref[...],
                preferred_element_type=jnp.float32)
    z = z + jnp.dot(attr_ref[...], fc1wa_ref[...],
                    preferred_element_type=jnp.float32)
    z = jnp.maximum(z + fc1b_ref[...], 0.0).astype(jnp.bfloat16)
    # (gpad, opad) = (8, 128): single unmasked lane-dense store.
    o_ref[...] = (jnp.dot(z, fc2w_ref[...], preferred_element_type=jnp.float32)
                  + fc2b_ref[...])


# ----------------------------------------------------------------------------
# plain-JAX glue
# ----------------------------------------------------------------------------
def build_norm_adj(edge_index, num_nodes):
    """D^{-1/2}(A+I)D^{-1/2} (GCNConv normalization), stored in bf16.
    Duplicate edges are summed (scatter-add), matching PyG message summation."""
    src, dst = edge_index
    a = jnp.zeros((num_nodes, num_nodes), jnp.float32)
    a = a.at[dst, src].add(1.0)          # messages flow src -> dst
    a = a + jnp.eye(num_nodes, dtype=jnp.float32)   # add self-loops
    deg = a.sum(axis=1)
    dinv = jnp.where(deg > 0, 1.0 / jnp.sqrt(deg), 0.0)
    return (dinv[:, None] * a * dinv[None, :]).astype(jnp.bfloat16)


def build_pool_matrix(batch, num_graphs, num_nodes):
    """P[g, n] = 1/count_g if batch[n] == g else 0 (global_mean_pool)."""
    onehot = (batch[None, :] == jnp.arange(num_graphs)[:, None]).astype(jnp.float32)
    counts = onehot.sum(axis=1, keepdims=True)
    return onehot / jnp.maximum(counts, 1.0)


def init_params(key, num_node_features, num_graph_attributes, output_dim,
                hidden_dim):
    keys = jax.random.split(key, 5)

    def lin(k, fan_in, fan_out):
        bound = 1.0 / jnp.sqrt(fan_in)
        kw, kb = jax.random.split(k)
        w = jax.random.uniform(kw, (fan_in, fan_out), jnp.float32, -bound, bound)
        b = jax.random.uniform(kb, (1, fan_out), jnp.float32, -bound, bound)
        return w, b

    p = {}
    p["w1"], p["b1"] = lin(keys[0], num_node_features, hidden_dim)
    p["w2"], p["b2"] = lin(keys[1], hidden_dim, hidden_dim)
    p["w3"], p["b3"] = lin(keys[2], hidden_dim, hidden_dim)
    for i in (1, 2, 3):
        p[f"ln{i}_g"] = jnp.ones((1, hidden_dim), jnp.float32)
        p[f"ln{i}_b"] = jnp.zeros((1, hidden_dim), jnp.float32)
    p["fc1_w"], p["fc1_b"] = lin(keys[3], hidden_dim + num_graph_attributes,
                                 hidden_dim)
    p["fc2_w"], p["fc2_b"] = lin(keys[4], hidden_dim, output_dim)
    return p


@functools.partial(jax.jit, static_argnames=("num_graphs",))
def gcn_model_forward(params, x, adj, batch, graph_attr, num_graphs):
    n, f = x.shape
    hdim = params["w1"].shape[1]
    adim = graph_attr.shape[1]
    odim = params["fc2_w"].shape[1]

    npad = _round_up(n, 128)
    fpad = _round_up(f, 128)
    hpad = _round_up(hdim, 128)
    apad = _round_up(adim, 128)
    opad = _round_up(odim, 128)
    gpad = _round_up(num_graphs, 8)

    bf = jnp.bfloat16
    # Lane-dense zero padding (128-lane multiples, 8-sublane graph rows).
    # All matmul operands are bf16 (f32 MXU accumulation inside the kernel);
    # biases / LN affine params stay f32 for the VPU epilogues.
    a_p = _pad2(adj, npad, npad)                                   # bf16 Â (stays in HBM)
    x_p = _pad2(x, npad, fpad).astype(bf)
    pool_p = _pad2(build_pool_matrix(batch, num_graphs, n), gpad, npad).astype(bf)
    attr_p = _pad2(graph_attr, gpad, apad).astype(bf)

    w1, b1 = _pad2(params["w1"], fpad, hpad).astype(bf), _pad2(params["b1"], 1, hpad)
    w2, b2 = _pad2(params["w2"], hpad, hpad).astype(bf), _pad2(params["b2"], 1, hpad)
    w3, b3 = _pad2(params["w3"], hpad, hpad).astype(bf), _pad2(params["b3"], 1, hpad)
    g1, be1 = _pad2(params["ln1_g"], 1, hpad), _pad2(params["ln1_b"], 1, hpad)
    g2, be2 = _pad2(params["ln2_g"], 1, hpad), _pad2(params["ln2_b"], 1, hpad)
    g3, be3 = _pad2(params["ln3_g"], 1, hpad), _pad2(params["ln3_b"], 1, hpad)
    # Split fc1 so torch.cat((pooled, graph_attr)) never materializes.
    fc1_wh = _pad2(params["fc1_w"][:hdim], hpad, hpad).astype(bf)
    fc1_wa = _pad2(params["fc1_w"][hdim:], apad, hpad).astype(bf)
    fc1_b = _pad2(params["fc1_b"], 1, hpad)
    fc2_w = _pad2(params["fc2_w"], hpad, opad).astype(bf)
    fc2_b = _pad2(params["fc2_b"], 1, opad)

    operands = (a_p, x_p,
                w1, b1, g1, be1,
                w2, b2, g2, be2,
                w3, b3, g3, be3,
                pool_p, attr_p,
                fc1_wh, fc1_wa, fc1_b, fc2_w, fc2_b)

    # Â stays in HBM (pl.ANY) and is copied once into a single-buffered VMEM
    # scratch inside the kernel (overlapped with the layer-1 X@W matmul);
    # everything else is small and uses whole-array VMEM BlockSpecs.
    in_specs = ([pl.BlockSpec(memory_space=pl.ANY)]
                + [_full_spec(op.shape) for op in operands[1:]])

    out = pl.pallas_call(
        functools.partial(fused_gcn_kernel, hidden_real=int(hdim)),
        out_shape=jax.ShapeDtypeStruct((gpad, opad), jnp.float32),
        in_specs=in_specs,
        out_specs=_full_spec((gpad, opad)),
        scratch_shapes=[pltpu.VMEM((npad, npad), jnp.bfloat16),   # resident Â
                        pltpu.SemaphoreType.DMA],
        compiler_params=pltpu.CompilerParams(
            vmem_limit_bytes=_vmem_limit_bytes()),
    )(*operands)
    return out[:num_graphs, :odim]


def reference_forward(params, x, adj, batch, graph_attr, num_graphs,
                      match_kernel_precision=False):
    """Pure-JAX reference. With match_kernel_precision=True every matmul uses
    bf16 operands with f32 accumulation and inter-layer activations are cast
    to bf16 — exactly like the kernel."""
    hi = jax.lax.Precision.HIGHEST
    if match_kernel_precision:
        def mm(a, b):
            return jnp.dot(a.astype(jnp.bfloat16), b.astype(jnp.bfloat16),
                           preferred_element_type=jnp.float32)
        cast_act = lambda t: t.astype(jnp.bfloat16)
        adj_mat = adj.astype(jnp.bfloat16)
    else:
        def mm(a, b):
            return jnp.dot(a.astype(jnp.float32), b.astype(jnp.float32),
                           precision=hi)
        cast_act = lambda t: t
        adj_mat = adj.astype(jnp.float32)

    def layer(h, w, b, g, be):
        hh = mm(adj_mat, cast_act(mm(h, w))) + b
        mu = hh.mean(-1, keepdims=True)
        var = ((hh - mu) ** 2).mean(-1, keepdims=True)
        hh = (hh - mu) / jnp.sqrt(var + LN_EPS) * g + be
        return cast_act(jnp.maximum(hh, 0.0))

    h = layer(x, params["w1"], params["b1"], params["ln1_g"], params["ln1_b"])
    h = layer(h, params["w2"], params["b2"], params["ln2_g"], params["ln2_b"])
    h = layer(h, params["w3"], params["b3"], params["ln3_g"], params["ln3_b"])
    pool_mat = build_pool_matrix(batch, num_graphs, x.shape[0])
    pooled = mm(pool_mat, h)
    z = jnp.concatenate([pooled, graph_attr.astype(pooled.dtype)], axis=1)
    h = jnp.maximum(mm(z, params["fc1_w"]) + params["fc1_b"], 0.0)
    return mm(cast_act(h), params["fc2_w"]) + params["fc2_b"]


# ----------------------------------------------------------------------------
if __name__ == "__main__":
    # Small, deterministic problem.
    num_node_features = 4
    num_graph_attributes = 3
    output_dim = 5
    hidden_dim = 32
    num_graphs = 2
    nodes_per_graph = 8
    num_nodes = num_graphs * nodes_per_graph

    key = jax.random.PRNGKey(0)
    k_x, k_attr, k_params = jax.random.split(key, 3)

    x = jax.random.normal(k_x, (num_nodes, num_node_features), jnp.float32)
    graph_attr = jax.random.normal(
        k_attr, (num_graphs, num_graph_attributes), jnp.float32)
    batch = jnp.repeat(jnp.arange(num_graphs), nodes_per_graph)

    # Ring graph inside each sub-graph, made undirected (both directions).
    src_list, dst_list = [], []
    for g in range(num_graphs):
        base = g * nodes_per_graph
        for i in range(nodes_per_graph):
            u = base + i
            v = base + (i + 1) % nodes_per_graph
            src_list += [u, v]
            dst_list += [v, u]
    edge_index = jnp.array([src_list, dst_list], dtype=jnp.int32)

    adj = build_norm_adj(edge_index, num_nodes)          # bf16 Â
    params = init_params(k_params, num_node_features, num_graph_attributes,
                         output_dim, hidden_dim)

    out = gcn_model_forward(params, x, adj, batch, graph_attr, num_graphs)
    out = jax.block_until_ready(out)
    assert out.shape == (num_graphs, output_dim)
    assert bool(jnp.all(jnp.isfinite(out)))

    # Tight check: reference with the same bf16-operand / f32-accumulate math.
    ref_matched = reference_forward(params, x, adj, batch, graph_attr,
                                    num_graphs, match_kernel_precision=True)
    assert jnp.allclose(out, ref_matched, atol=2e-3, rtol=2e-3), \
        "mismatch vs precision-matched reference"

    # Semantic check: pure-f32 module math (bf16 operand quantization is ~1%).
    ref_f32 = reference_forward(params, x, adj, batch, graph_attr, num_graphs)
    assert jnp.allclose(out, ref_f32, atol=5e-2, rtol=5e-2), \
        "mismatch vs f32 reference"

    print("KERNEL_OK")
</pallas_src>

<mosaic_0001>
module attributes {stable_mosaic.version = 11 : i64} {
  func.func @fused_gcn_kernel(%arg0: memref<128x128xbf16, #tpu.memory_space<any>>, %arg1: memref<128x128xbf16, #tpu.memory_space<vmem>>, %arg2: memref<128x128xbf16, #tpu.memory_space<vmem>>, %arg3: memref<1x128xf32, #tpu.memory_space<vmem>>, %arg4: memref<1x128xf32, #tpu.memory_space<vmem>>, %arg5: memref<1x128xf32, #tpu.memory_space<vmem>>, %arg6: memref<128x128xbf16, #tpu.memory_space<vmem>>, %arg7: memref<1x128xf32, #tpu.memory_space<vmem>>, %arg8: memref<1x128xf32, #tpu.memory_space<vmem>>, %arg9: memref<1x128xf32, #tpu.memory_space<vmem>>, %arg10: memref<128x128xbf16, #tpu.memory_space<vmem>>, %arg11: memref<1x128xf32, #tpu.memory_space<vmem>>, %arg12: memref<1x128xf32, #tpu.memory_space<vmem>>, %arg13: memref<1x128xf32, #tpu.memory_space<vmem>>, %arg14: memref<8x128xbf16, #tpu.memory_space<vmem>>, %arg15: memref<8x128xbf16, #tpu.memory_space<vmem>>, %arg16: memref<128x128xbf16, #tpu.memory_space<vmem>>, %arg17: memref<128x128xbf16, #tpu.memory_space<vmem>>, %arg18: memref<1x128xf32, #tpu.memory_space<vmem>>, %arg19: memref<128x128xbf16, #tpu.memory_space<vmem>>, %arg20: memref<1x128xf32, #tpu.memory_space<vmem>>, %arg21: memref<8x128xf32, #tpu.memory_space<vmem>>, %arg22: memref<128x128xbf16, #tpu.memory_space<vmem>>, %arg23: memref<!tpu.dma_semaphore, #tpu.memory_space<semaphore_mem>>) attributes {dimension_semantics = [], scalar_prefetch = 0 : i64, scratch_operands = 2 : i64, tpu.core_type = #tpu.core_type<tc>} {
    tpu.enqueue_dma source(%arg0 : memref<128x128xbf16, #tpu.memory_space<any>>) target(%arg22 : memref<128x128xbf16, #tpu.memory_space<vmem>>) target_semaphore(%arg23 : memref<!tpu.dma_semaphore, #tpu.memory_space<semaphore_mem>>)
    %0 = tpu.iota {dimensions = array<i32: 1>} : vector<1x128xi32>
    %c32_i32 = arith.constant 32 : i32
    %1 = vector.broadcast %c32_i32 : i32 to vector<1x128xi32>
    %2 = arith.cmpi slt, %0, %1 : vector<1x128xi32>
    %c0 = arith.constant 0 : index
    %c0_0 = arith.constant 0 : index
    %3 = vector.load %arg1[%c0, %c0_0] : memref<128x128xbf16, #tpu.memory_space<vmem>>, vector<128x128xbf16>
    %c0_1 = arith.constant 0 : index
    %c0_2 = arith.constant 0 : index
    %4 = vector.load %arg2[%c0_1, %c0_2] : memref<128x128xbf16, #tpu.memory_space<vmem>>, vector<128x128xbf16>
    %cst = arith.constant dense<0.000000e+00> : vector<128x128xf32>
    %5 = tpu.matmul %3, %4, %cst {dimension_numbers = #tpu.dot_dimension_numbers<[1], [0], [0], [1], [0, 0, 1, 1], [], []>} : vector<128x128xbf16>, vector<128x128xbf16>, vector<128x128xf32> -> vector<128x128xf32>
    %6 = arith.truncf %5 : vector<128x128xf32> to vector<128x128xbf16>
    tpu.wait_dma2 semaphore(%arg23 : memref<!tpu.dma_semaphore, #tpu.memory_space<semaphore_mem>>) src(%arg0 : memref<128x128xbf16, #tpu.memory_space<any>>) dst(%arg22 : memref<128x128xbf16, #tpu.memory_space<vmem>>)
    %c0_3 = arith.constant 0 : index
    %c0_4 = arith.constant 0 : index
    %7 = vector.load %arg22[%c0_3, %c0_4] : memref<128x128xbf16, #tpu.memory_space<vmem>>, vector<128x128xbf16>
    %cst_5 = arith.constant dense<0.000000e+00> : vector<128x128xf32>
    %8 = tpu.matmul %7, %6, %cst_5 {dimension_numbers = #tpu.dot_dimension_numbers<[1], [0], [0], [1], [0, 0, 1, 1], [], []>} : vector<128x128xbf16>, vector<128x128xbf16>, vector<128x128xf32> -> vector<128x128xf32>
    %c0_6 = arith.constant 0 : index
    %c0_7 = arith.constant 0 : index
    %9 = vector.load %arg3[%c0_6, %c0_7] : memref<1x128xf32, #tpu.memory_space<vmem>>, vector<1x128xf32>
    %10 = vector.broadcast %9 : vector<1x128xf32> to vector<128x128xf32>
    %11 = arith.addf %8, %10 : vector<128x128xf32>
    %cst_8 = arith.constant dense<0.000000e+00> : vector<128xf32>
    %12 = vector.multi_reduction <add>, %11, %cst_8 [1] : vector<128x128xf32> to vector<128xf32>
    %13 = vector.shape_cast %12 : vector<128xf32> to vector<128x1xf32>
    %cst_9 = arith.constant 3.125000e-02 : f32
    %14 = vector.broadcast %cst_9 : f32 to vector<128x1xf32>
    %15 = arith.mulf %13, %14 : vector<128x1xf32>
    %16 = vector.broadcast %15 : vector<128x1xf32> to vector<128x128xf32>
    %17 = arith.subf %11, %16 : vector<128x128xf32>
    %18 = arith.mulf %17, %17 : vector<128x128xf32>
    %cst_10 = arith.constant 0.000000e+00 : f32
    %19 = vector.shape_cast %2 : vector<1x128xi1> to vector<1x128xi1>
    %20 = vector.broadcast %19 : vector<1x128xi1> to vector<128x128xi1>
    %21 = vector.broadcast %cst_10 : f32 to vector<128x128xf32>
    %22 = arith.select %20, %18, %21 : vector<128x128xi1>, vector<128x128xf32>
    %cst_11 = arith.constant dense<0.000000e+00> : vector<128xf32>
    %23 = vector.multi_reduction <add>, %22, %cst_11 [1] : vector<128x128xf32> to vector<128xf32>
    %24 = vector.shape_cast %23 : vector<128xf32> to vector<128x1xf32>
    %cst_12 = arith.constant 3.125000e-02 : f32
    %25 = vector.broadcast %cst_12 : f32 to vector<128x1xf32>
    %26 = arith.mulf %24, %25 : vector<128x1xf32>
    %cst_13 = arith.constant 9.99999974E-6 : f32
    %27 = vector.broadcast %cst_13 : f32 to vector<128x1xf32>
    %28 = arith.addf %26, %27 : vector<128x1xf32>
    %29 = math.rsqrt %28 : vector<128x1xf32>
    %30 = vector.broadcast %29 : vector<128x1xf32> to vector<128x128xf32>
    %31 = arith.mulf %17, %30 : vector<128x128xf32>
    %c0_14 = arith.constant 0 : index
    %c0_15 = arith.constant 0 : index
    %32 = vector.load %arg4[%c0_14, %c0_15] : memref<1x128xf32, #tpu.memory_space<vmem>>, vector<1x128xf32>
    %33 = vector.broadcast %32 : vector<1x128xf32> to vector<128x128xf32>
    %34 = arith.mulf %31, %33 : vector<128x128xf32>
    %c0_16 = arith.constant 0 : index
    %c0_17 = arith.constant 0 : index
    %35 = vector.load %arg5[%c0_16, %c0_17] : memref<1x128xf32, #tpu.memory_space<vmem>>, vector<1x128xf32>
    %36 = vector.broadcast %35 : vector<1x128xf32> to vector<128x128xf32>
    %37 = arith.addf %34, %36 : vector<128x128xf32>
    %cst_18 = arith.constant 0.000000e+00 : f32
    %38 = vector.broadcast %cst_18 : f32 to vector<128x128xf32>
    %39 = arith.maximumf %37, %38 : vector<128x128xf32>
    %40 = arith.truncf %39 : vector<128x128xf32> to vector<128x128xbf16>
    %c0_19 = arith.constant 0 : index
    %c0_20 = arith.constant 0 : index
    %41 = vector.load %arg6[%c0_19, %c0_20] : memref<128x128xbf16, #tpu.memory_space<vmem>>, vector<128x128xbf16>
    %cst_21 = arith.constant dense<0.000000e+00> : vector<128x128xf32>
    %42 = tpu.matmul %40, %41, %cst_21 {dimension_numbers = #tpu.dot_dimension_numbers<[1], [0], [0], [1], [0, 0, 1, 1], [], []>} : vector<128x128xbf16>, vector<128x128xbf16>, vector<128x128xf32> -> vector<128x128xf32>
    %43 = arith.truncf %42 : vector<128x128xf32> to vector<128x128xbf16>
    %cst_22 = arith.constant dense<0.000000e+00> : vector<128x128xf32>
    %44 = tpu.matmul %7, %43, %cst_22 {dimension_numbers = #tpu.dot_dimension_numbers<[1], [0], [0], [1], [0, 0, 1, 1], [], []>} : vector<128x128xbf16>, vector<128x128xbf16>, vector<128x128xf32> -> vector<128x128xf32>
    %c0_23 = arith.constant 0 : index
    %c0_24 = arith.constant 0 : index
    %45 = vector.load %arg7[%c0_23, %c0_24] : memref<1x128xf32, #tpu.memory_space<vmem>>, vector<1x128xf32>
    %46 = vector.broadcast %45 : vector<1x128xf32> to vector<128x128xf32>
    %47 = arith.addf %44, %46 : vector<128x128xf32>
    %cst_25 = arith.constant dense<0.000000e+00> : vector<128xf32>
    %48 = vector.multi_reduction <add>, %47, %cst_25 [1] : vector<128x128xf32> to vector<128xf32>
    %49 = vector.shape_cast %48 : vector<128xf32> to vector<128x1xf32>
    %cst_26 = arith.constant 3.125000e-02 : f32
    %50 = vector.broadcast %cst_26 : f32 to vector<128x1xf32>
    %51 = arith.mulf %49, %50 : vector<128x1xf32>
    %52 = vector.broadcast %51 : vector<128x1xf32> to vector<128x128xf32>
    %53 = arith.subf %47, %52 : vector<128x128xf32>
    %54 = arith.mulf %53, %53 : vector<128x128xf32>
    %cst_27 = arith.constant 0.000000e+00 : f32
    %55 = vector.shape_cast %2 : vector<1x128xi1> to vector<1x128xi1>
    %56 = vector.broadcast %55 : vector<1x128xi1> to vector<128x128xi1>
    %57 = vector.broadcast %cst_27 : f32 to vector<128x128xf32>
    %58 = arith.select %56, %54, %57 : vector<128x128xi1>, vector<128x128xf32>
    %cst_28 = arith.constant dense<0.000000e+00> : vector<128xf32>
    %59 = vector.multi_reduction <add>, %58, %cst_28 [1] : vector<128x128xf32> to vector<128xf32>
    %60 = vector.shape_cast %59 : vector<128xf32> to vector<128x1xf32>
    %cst_29 = arith.constant 3.125000e-02 : f32
    %61 = vector.broadcast %cst_29 : f32 to vector<128x1xf32>
    %62 = arith.mulf %60, %61 : vector<128x1xf32>
    %cst_30 = arith.constant 9.99999974E-6 : f32
    %63 = vector.broadcast %cst_30 : f32 to vector<128x1xf32>
    %64 = arith.addf %62, %63 : vector<128x1xf32>
    %65 = math.rsqrt %64 : vector<128x1xf32>
    %66 = vector.broadcast %65 : vector<128x1xf32> to vector<128x128xf32>
    %67 = arith.mulf %53, %66 : vector<128x128xf32>
    %c0_31 = arith.constant 0 : index
    %c0_32 = arith.constant 0 : index
    %68 = vector.load %arg8[%c0_31, %c0_32] : memref<1x128xf32, #tpu.memory_space<vmem>>, vector<1x128xf32>
    %69 = vector.broadcast %68 : vector<1x128xf32> to vector<128x128xf32>
    %70 = arith.mulf %67, %69 : vector<128x128xf32>
    %c0_33 = arith.constant 0 : index
    %c0_34 = arith.constant 0 : index
    %71 = vector.load %arg9[%c0_33, %c0_34] : memref<1x128xf32, #tpu.memory_space<vmem>>, vector<1x128xf32>
    %72 = vector.broadcast %71 : vector<1x128xf32> to vector<128x128xf32>
    %73 = arith.addf %70, %72 : vector<128x128xf32>
    %cst_35 = arith.constant 0.000000e+00 : f32
    %74 = vector.broadcast %cst_35 : f32 to vector<128x128xf32>
    %75 = arith.maximumf %73, %74 : vector<128x128xf32>
    %76 = arith.truncf %75 : vector<128x128xf32> to vector<128x128xbf16>
    %c0_36 = arith.constant 0 : index
    %c0_37 = arith.constant 0 : index
    %77 = vector.load %arg10[%c0_36, %c0_37] : memref<128x128xbf16, #tpu.memory_space<vmem>>, vector<128x128xbf16>
    %cst_38 = arith.constant dense<0.000000e+00> : vector<128x128xf32>
    %78 = tpu.matmul %76, %77, %cst_38 {dimension_numbers = #tpu.dot_dimension_numbers<[1], [0], [0], [1], [0, 0, 1, 1], [], []>} : vector<128x128xbf16>, vector<128x128xbf16>, vector<128x128xf32> -> vector<128x128xf32>
    %79 = arith.truncf %78 : vector<128x128xf32> to vector<128x128xbf16>
    %cst_39 = arith.constant dense<0.000000e+00> : vector<128x128xf32>
    %80 = tpu.matmul %7, %79, %cst_39 {dimension_numbers = #tpu.dot_dimension_numbers<[1], [0], [0], [1], [0, 0, 1, 1], [], []>} : vector<128x128xbf16>, vector<128x128xbf16>, vector<128x128xf32> -> vector<128x128xf32>
    %c0_40 = arith.constant 0 : index
    %c0_41 = arith.constant 0 : index
    %81 = vector.load %arg11[%c0_40, %c0_41] : memref<1x128xf32, #tpu.memory_space<vmem>>, vector<1x128xf32>
    %82 = vector.broadcast %81 : vector<1x128xf32> to vector<128x128xf32>
    %83 = arith.addf %80, %82 : vector<128x128xf32>
    %cst_42 = arith.constant dense<0.000000e+00> : vector<128xf32>
    %84 = vector.multi_reduction <add>, %83, %cst_42 [1] : vector<128x128xf32> to vector<128xf32>
    %85 = vector.shape_cast %84 : vector<128xf32> to vector<128x1xf32>
    %cst_43 = arith.constant 3.125000e-02 : f32
    %86 = vector.broadcast %cst_43 : f32 to vector<128x1xf32>
    %87 = arith.mulf %85, %86 : vector<128x1xf32>
    %88 = vector.broadcast %87 : vector<128x1xf32> to vector<128x128xf32>
    %89 = arith.subf %83, %88 : vector<128x128xf32>
    %90 = arith.mulf %89, %89 : vector<128x128xf32>
    %cst_44 = arith.constant 0.000000e+00 : f32
    %91 = vector.shape_cast %2 : vector<1x128xi1> to vector<1x128xi1>
    %92 = vector.broadcast %91 : vector<1x128xi1> to vector<128x128xi1>
    %93 = vector.broadcast %cst_44 : f32 to vector<128x128xf32>
    %94 = arith.select %92, %90, %93 : vector<128x128xi1>, vector<128x128xf32>
    %cst_45 = arith.constant dense<0.000000e+00> : vector<128xf32>
    %95 = vector.multi_reduction <add>, %94, %cst_45 [1] : vector<128x128xf32> to vector<128xf32>
    %96 = vector.shape_cast %95 : vector<128xf32> to vector<128x1xf32>
    %cst_46 = arith.constant 3.125000e-02 : f32
    %97 = vector.broadcast %cst_46 : f32 to vector<128x1xf32>
    %98 = arith.mulf %96, %97 : vector<128x1xf32>
    %cst_47 = arith.constant 9.99999974E-6 : f32
    %99 = vector.broadcast %cst_47 : f32 to vector<128x1xf32>
    %100 = arith.addf %98, %99 : vector<128x1xf32>
    %101 = math.rsqrt %100 : vector<128x1xf32>
    %102 = vector.broadcast %101 : vector<128x1xf32> to vector<128x128xf32>
    %103 = arith.mulf %89, %102 : vector<128x128xf32>
    %c0_48 = arith.constant 0 : index
    %c0_49 = arith.constant 0 : index
    %104 = vector.load %arg12[%c0_48, %c0_49] : memref<1x128xf32, #tpu.memory_space<vmem>>, vector<1x128xf32>
    %105 = vector.broadcast %104 : vector<1x128xf32> to vector<128x128xf32>
    %106 = arith.mulf %103, %105 : vector<128x128xf32>
    %c0_50 = arith.constant 0 : index
    %c0_51 = arith.constant 0 : index
    %107 = vector.load %arg13[%c0_50, %c0_51] : memref<1x128xf32, #tpu.memory_space<vmem>>, vector<1x128xf32>
    %108 = vector.broadcast %107 : vector<1x128xf32> to vector<128x128xf32>
    %109 = arith.addf %106, %108 : vector<128x128xf32>
    %cst_52 = arith.constant 0.000000e+00 : f32
    %110 = vector.broadcast %cst_52 : f32 to vector<128x128xf32>
    %111 = arith.maximumf %109, %110 : vector<128x128xf32>
    %112 = arith.truncf %111 : vector<128x128xf32> to vector<128x128xbf16>
    %c0_53 = arith.constant 0 : index
    %c0_54 = arith.constant 0 : index
    %113 = vector.load %arg14[%c0_53, %c0_54] : memref<8x128xbf16, #tpu.memory_space<vmem>>, vector<8x128xbf16>
    %cst_55 = arith.constant dense<0.000000e+00> : vector<8x128xf32>
    %114 = tpu.matmul %113, %112, %cst_55 {dimension_numbers = #tpu.dot_dimension_numbers<[1], [0], [0], [1], [0, 0, 1, 1], [], []>} : vector<8x128xbf16>, vector<128x128xbf16>, vector<8x128xf32> -> vector<8x128xf32>
    %115 = arith.truncf %114 : vector<8x128xf32> to vector<8x128xbf16>
    %c0_56 = arith.constant 0 : index
    %c0_57 = arith.constant 0 : index
    %116 = vector.load %arg16[%c0_56, %c0_57] : memref<128x128xbf16, #tpu.memory_space<vmem>>, vector<128x128xbf16>
    %cst_58 = arith.constant dense<0.000000e+00> : vector<8x128xf32>
    %117 = tpu.matmul %115, %116, %cst_58 {dimension_numbers = #tpu.dot_dimension_numbers<[1], [0], [0], [1], [0, 0, 1, 1], [], []>} : vector<8x128xbf16>, vector<128x128xbf16>, vector<8x128xf32> -> vector<8x128xf32>
    %c0_59 = arith.constant 0 : index
    %c0_60 = arith.constant 0 : index
    %118 = vector.load %arg15[%c0_59, %c0_60] : memref<8x128xbf16, #tpu.memory_space<vmem>>, vector<8x128xbf16>
    %c0_61 = arith.constant 0 : index
    %c0_62 = arith.constant 0 : index
    %119 = vector.load %arg17[%c0_61, %c0_62] : memref<128x128xbf16, #tpu.memory_space<vmem>>, vector<128x128xbf16>
    %cst_63 = arith.constant dense<0.000000e+00> : vector<8x128xf32>
    %120 = tpu.matmul %118, %119, %cst_63 {dimension_numbers = #tpu.dot_dimension_numbers<[1], [0], [0], [1], [0, 0, 1, 1], [], []>} : vector<8x128xbf16>, vector<128x128xbf16>, vector<8x128xf32> -> vector<8x128xf32>
    %121 = arith.addf %117, %120 : vector<8x128xf32>
    %c0_64 = arith.constant 0 : index
    %c0_65 = arith.constant 0 : index
    %122 = vector.load %arg18[%c0_64, %c0_65] : memref<1x128xf32, #tpu.memory_space<vmem>>, vector<1x128xf32>
    %123 = vector.broadcast %122 : vector<1x128xf32> to vector<8x128xf32>
    %124 = arith.addf %121, %123 : vector<8x128xf32>
    %cst_66 = arith.constant 0.000000e+00 : f32
    %125 = vector.broadcast %cst_66 : f32 to vector<8x128xf32>
    %126 = arith.maximumf %124, %125 : vector<8x128xf32>
    %127 = arith.truncf %126 : vector<8x128xf32> to vector<8x128xbf16>
    %c0_67 = arith.constant 0 : index
    %c0_68 = arith.constant 0 : index
    %128 = vector.load %arg19[%c0_67, %c0_68] : memref<128x128xbf16, #tpu.memory_space<vmem>>, vector<128x128xbf16>
    %cst_69 = arith.constant dense<0.000000e+00> : vector<8x128xf32>
    %129 = tpu.matmul %127, %128, %cst_69 {dimension_numbers = #tpu.dot_dimension_numbers<[1], [0], [0], [1], [0, 0, 1, 1], [], []>} : vector<8x128xbf16>, vector<128x128xbf16>, vector<8x128xf32> -> vector<8x128xf32>
    %c0_70 = arith.constant 0 : index
    %c0_71 = arith.constant 0 : index
    %130 = vector.load %arg20[%c0_70, %c0_71] : memref<1x128xf32, #tpu.memory_space<vmem>>, vector<1x128xf32>
    %131 = vector.broadcast %130 : vector<1x128xf32> to vector<8x128xf32>
    %132 = arith.addf %129, %131 : vector<8x128xf32>
    %c0_72 = arith.constant 0 : index
    %c0_73 = arith.constant 0 : index
    %133 = vector.load %arg21[%c0_72, %c0_73] : memref<8x128xf32, #tpu.memory_space<vmem>>, vector<8x128xf32>
    tpu.vector_store %arg21[%c0_72, %c0_73], %132 {strides = array<i32>} : memref<8x128xf32, #tpu.memory_space<vmem>>, vector<8x128xf32>,
    return
  }
}

</mosaic_0001>

<bundles_post_ra>
// kernel: gcn_model_forward.1
= control target key start
LH: loop header
LB: loop body
LE: loop exit
PB: predicated region body
PF: predicated region fallthrough
CT: control target
= control target key end

     0   :  { %s3817_s0 = inlined_call_operand.vmem [shape: bf16[128,128], index: 0, kind: input, shape index: {}]   ;;  %s3818_s1 = inlined_call_operand.vmem [shape: bf16[128,128], index: 1, kind: input, shape index: {}]   ;;  %s3819_s2 = inlined_call_operand.vmem [shape: bf16[128,128], index: 2, kind: input, shape index: {}]   ;;  %s3820_s3 = inlined_call_operand.vmem [shape: f32[1,128], index: 3, kind: input, shape index: {}]   ;;  %s3821_s4 = inlined_call_operand.vmem [shape: f32[1,128], index: 4, kind: input, shape index: {}]   ;;  %s3822_s5 = inlined_call_operand.vmem [shape: f32[1,128], index: 5, kind: input, shape index: {}]   ;;  %s3823_s6 = inlined_call_operand.vmem [shape: bf16[128,128], index: 6, kind: input, shape index: {}]   ;;  %s3824_s7 = inlined_call_operand.vmem [shape: f32[1,128], index: 7, kind: input, shape index: {}]   ;;  %s3825_s8 = inlined_call_operand.vmem [shape: f32[1,128], index: 8, kind: input, shape index: {}]   ;;  %s3826_s9 = inlined_call_operand.vmem [shape: f32[1,128], index: 9, kind: input, shape index: {}]   ;;  %s3827_s10 = inlined_call_operand.vmem [shape: bf16[128,128], index: 10, kind: input, shape index: {}]   ;;  %s3828_s11 = inlined_call_operand.vmem [shape: f32[1,128], index: 11, kind: input, shape index: {}]   ;;  %s3829_s12 = inlined_call_operand.vmem [shape: f32[1,128], index: 12, kind: input, shape index: {}]   ;;  %s3830_s13 = inlined_call_operand.vmem [shape: f32[1,128], index: 13, kind: input, shape index: {}]   ;;  %s3831_s14 = inlined_call_operand.vmem [shape: bf16[8,128], index: 14, kind: input, shape index: {}]   ;;  %s3832_s15 = inlined_call_operand.vmem [shape: bf16[8,128], index: 15, kind: input, shape index: {}]   ;;  %s3833_s16 = inlined_call_operand.vmem [shape: bf16[128,128], index: 16, kind: input, shape index: {}]   ;;  %s3834_s17 = inlined_call_operand.vmem [shape: bf16[128,128], index: 17, kind: input, shape index: {}]   ;;  %s3835_s18 = inlined_call_operand.vmem [shape: f32[1,128], index: 18, kind: input, shape index: {}]   ;;  %s3836_s19 = inlined_call_operand.vmem [shape: bf16[128,128], index: 19, kind: input, shape index: {}]   ;;  %s3837_s20 = inlined_call_operand.vmem [shape: f32[1,128], index: 20, kind: input, shape index: {}]   ;;  %s3838_s21 = inlined_call_operand.vmem [shape: f32[8,128], index: 21, kind: output, shape index: {}]  }
   0x1   :  { %3842 = sst [smem:[#allocation6_spill]] %s3817_s0 }
   0x2   :  { %3843 = sst [smem:[#allocation7_spill]] %s3818_s1  ;;  %s3848_s26 = sld [smem:[#allocation6_spill]] }
   0x3   :  { %3844 = sst [smem:[#allocation8_spill]] %s3819_s2 }
   0x4   :  { %3845 = sst [smem:[#allocation9_spill]] %s3820_s3 }
   0x5   :  { %3846 = sst [smem:[#allocation10_spill]] %s3821_s4 }
   0x6   :  { %3847 = sst [smem:[#allocation11_spill]] %s3822_s5 }
   0x8   :  { %v2943_v0 = vld [vmem:[%s3848_s26] sm:$0xff]  ;;  %v2948_v1 = vld [vmem:[%s3848_s26 + $0x8] sm:$0xff]  ;;  %v2953_v2 = vld [vmem:[%s3848_s26 + $0x10] sm:$0xff] }
   0x9   :  { %v2958_v3 = vld [vmem:[%s3848_s26 + $0x18] sm:$0xff]  ;;  %v2963_v4 = vld [vmem:[%s3848_s26 + $0x20] sm:$0xff]  ;;  %v2968_v5 = vld [vmem:[%s3848_s26 + $0x28] sm:$0xff] }
   0xa   :  { %v2973_v6 = vld [vmem:[%s3848_s26 + $0x30] sm:$0xff]  ;;  %v2978_v7 = vld [vmem:[%s3848_s26 + $0x38] sm:$0xff] }
   0xb   :  { %122 = vsyncadd [#allocation3], 1024  ;;  %v123_v8 = vlaneseq  ;;  %s3849_s28 = sld [smem:[#allocation8_spill]]  ;;  %s3850_s1 = sld [smem:[#allocation7_spill]]  ;;  %2448 = vmatprep.mubr.bf16.mxu1 %v2943_v0 }
   0xd   :  { %v2983_v10 = vand.u32 127, %v123_v8 }
   0xf   :  { %vm125_vm0 = vcmp.lt.s32.totalorder %v2983_v10, 32 }
  0x11   :  { %v2674_v9 = vld [vmem:[%s3849_s28] sm:$0xff]   ;;  %v2675_v11 = vld [vmem:[%s3849_s28 + $0x8] sm:$0xff]   ;;  %v2676_v12 = vld [vmem:[%s3849_s28 + $0x10] sm:$0xff]  }
  0x12   :  { %2400 = vmatprep.subr.bf16.mxu0 %v2674_v9  ;;  %v2677_v13 = vld [vmem:[%s3849_s28 + $0x18] sm:$0xff]   ;;  %v2682_v14 = vld [vmem:[%s3850_s1] sm:$0xff]   ;;  %v2679_v16 = vld [vmem:[%s3849_s28 + $0x28] sm:$0xff]  }
  0x13   :  { %2401 = vmatpush3.bf16.msra.mxu0 %v2674_v9  ;;  %2416 = vmatprep.mubr.bf16.mxu0 %v2682_v14  ;;  %v2678_v15 = vld [vmem:[%s3849_s28 + $0x20] sm:$0xff]   ;;  %v2680_v17 = vld [vmem:[%s3849_s28 + $0x30] sm:$0xff]   ;;  %v2681_v18 = vld [vmem:[%s3849_s28 + $0x38] sm:$0xff]  }
  0x14   :  { %2402 = vmatprep.subr.bf16.mxu0 %v2675_v11  ;;  %v2683_v19 = vld [vmem:[%s3850_s1 + $0x8] sm:$0xff]   ;;  %v2684_v20 = vld [vmem:[%s3850_s1 + $0x10] sm:$0xff]   ;;  %v2685_v21 = vld [vmem:[%s3850_s1 + $0x18] sm:$0xff]  }
  0x15   :  { %v2686_v22 = vld [vmem:[%s3850_s1 + $0x20] sm:$0xff]   ;;  %v2687_v23 = vld [vmem:[%s3850_s1 + $0x28] sm:$0xff]   ;;  %v2688_v24 = vld [vmem:[%s3850_s1 + $0x30] sm:$0xff]  }
  0x16   :  { %v2689_v25 = vld [vmem:[%s3850_s1 + $0x38] sm:$0xff]  }
  0x17   :  { %2403 = vmatpush3.bf16.msra.mxu0 %v2675_v11 }
  0x18   :  { %2404 = vmatprep.subr.bf16.mxu0 %v2676_v12 }
  0x1b   :  { %2405 = vmatpush3.bf16.msra.mxu0 %v2676_v12 }
  0x1c   :  { %2406 = vmatprep.subr.bf16.mxu0 %v2677_v13 }
  0x1f   :  { %2407 = vmatpush3.bf16.msra.mxu0 %v2677_v13 }
  0x20   :  { %2408 = vmatprep.subr.bf16.mxu0 %v2678_v15 }
  0x23   :  { %2409 = vmatpush3.bf16.msra.mxu0 %v2678_v15 }
  0x24   :  { %2410 = vmatprep.subr.bf16.mxu0 %v2679_v16 }
  0x27   :  { %2411 = vmatpush3.bf16.msra.mxu0 %v2679_v16 }
  0x28   :  { %2412 = vmatprep.subr.bf16.mxu0 %v2680_v17 }
  0x2b   :  { %2413 = vmatpush3.bf16.msra.mxu0 %v2680_v17 }
  0x2c   :  { %2414 = vmatprep.subr.bf16.mxu0 %v2681_v18 }
  0x2f   :  { %2415 = vmatpush3.bf16.msra.mxu0 %v2681_v18 }
  0x32   :  { %2417 = vmatmul.mubr.bf16.vlgmr.msra.gmra.mrb[0].mxu0 %v2683_v19 }
  0x33   :  { %2420 = vmatprep.mubr.bf16.mxu0 %v2684_v20 }
  0x3a   :  { %2421 = vmatmul.mubr.bf16.gmra.mrb[4].mxu0 %v2685_v21 }
  0x3b   :  { %2424 = vmatprep.mubr.bf16.mxu0 %v2686_v22 }
  0x42   :  { %2425 = vmatmul.mubr.bf16.gmra.mrb[8].mxu0 %v2687_v23 }
  0x43   :  { %2428 = vmatprep.mubr.bf16.mxu0 %v2688_v24 }
  0x4a   :  { %2429 = vmatmul.mubr.bf16.gmra.mrb[12].mxu0 %v2689_v25 }
 0x105   :  { %v2418_v26 = vpop.f32.mrb[0].mxu0 }
 0x106   :  { %v288_v27 = vpop.f32.mrb[1].mxu0 }
 0x107   :  { %v2419_v28 = vpop.f32.mrb[2].mxu0 }
 0x108   :  { %v352_v29 = vpack.c.bf16 %v2419_v28, %v2418_v26  ;;  %v291_v30 = vpop.f32.mrb[3].mxu0 }
 0x109   :  { %v351_v31 = vpack.c.bf16 %v291_v30, %v288_v27 }
 0x10b   :  { %2432 = vmatprep.subr.bf16.mxu1 %v351_v31 }
 0x10d   :  { %v2422_v32 = vpop.f32.mrb[4].mxu0 }
 0x10e   :  { %v304_v33 = vpop.f32.mrb[5].mxu0 }
 0x10f   :  { %v2423_v34 = vpop.f32.mrb[6].mxu0 }
 0x110   :  { %v354_v35 = vpack.c.bf16 %v2423_v34, %v2422_v32  ;;  %v307_v36 = vpop.f32.mrb[7].mxu0 }
 0x111   :  { %v353_v37 = vpack.c.bf16 %v307_v36, %v304_v33 }
 0x115   :  { %v2426_v38 = vpop.f32.mrb[8].mxu0 }
 0x116   :  { %v320_v39 = vpop.f32.mrb[9].mxu0 }
 0x117   :  { %v2427_v40 = vpop.f32.mrb[10].mxu0 }
 0x118   :  { %v356_v41 = vpack.c.bf16 %v2427_v40, %v2426_v38  ;;  %v323_v42 = vpop.f32.mrb[11].mxu0 }
 0x119   :  { %v355_v43 = vpack.c.bf16 %v323_v42, %v320_v39 }
 0x11d   :  { %v2430_v44 = vpop.f32.mrb[12].mxu0 }
 0x11e   :  { %v336_v45 = vpop.f32.mrb[13].mxu0 }
 0x11f   :  { %v2431_v46 = vpop.f32.mrb[14].mxu0 }
 0x120   :  { %v358_v47 = vpack.c.bf16 %v2431_v46, %v2430_v44  ;;  %v339_v48 = vpop.f32.mrb[15].mxu0 }
 0x121   :  { %v357_v49 = vpack.c.bf16 %v339_v48, %v336_v45 }
 0x122   :  { %2826 = dma.done.wait [#allocation3], 1024 }
 0x123   :  { %2827 = vsyncadd [#allocation3], 4294966272  ;;  %2433 = vmatpush3.bf16.msra.mxu1 %v351_v31  ;;  %s3851_s30 = sld [smem:[#allocation9_spill]]  ;;  %s3852_s23 = sld [smem:[#allocation10_spill]]  ;;  %vm2829_vm1 = vmmov 0   ;;  %v2708_v10 = vld [vmem:[%s3834_s17 + $0x8] sm:$0xff]  }
 0x124   :  { %2434 = vmatprep.subr.bf16.mxu1 %v352_v29  ;;  %s3853_s25 = sld [smem:[#allocation11_spill]] }
 0x127   :  { %2435 = vmatpush3.bf16.msra.mxu1 %v352_v29 }
 0x128   :  { %2436 = vmatprep.subr.bf16.mxu1 %v353_v37 }
 0x129   :  { %v2216_v50 = vld [vmem:[%s3851_s30] ss:$0 sm:$0xff] }
 0x12b   :  { %2437 = vmatpush3.bf16.msra.mxu1 %v353_v37 }
 0x12c   :  { %2438 = vmatprep.subr.bf16.mxu1 %v354_v35 }
 0x12f   :  { %2439 = vmatpush3.bf16.msra.mxu1 %v354_v35 }
 0x130   :  { %2440 = vmatprep.subr.bf16.mxu1 %v355_v43 }
 0x133   :  { %2441 = vmatpush3.bf16.msra.mxu1 %v355_v43 }
 0x134   :  { %2442 = vmatprep.subr.bf16.mxu1 %v356_v41 }
 0x137   :  { %2443 = vmatpush3.bf16.msra.mxu1 %v356_v41 }
 0x138   :  { %2444 = vmatprep.subr.bf16.mxu1 %v357_v49 }
 0x13b   :  { %2445 = vmatpush3.bf16.msra.mxu1 %v357_v49 }
 0x13c   :  { %2446 = vmatprep.subr.bf16.mxu1 %v358_v47 }
 0x13f   :  { %2447 = vmatpush3.bf16.msra.mxu1 %v358_v47 }
 0x142   :  { %2449 = vmatmul.mubr.bf16.vlgmr.msra.gmra.mrb[0].mxu1 %v2948_v1 }
 0x143   :  { %2452 = vmatprep.mubr.bf16.mxu1 %v2953_v2 }
 0x14a   :  { %2453 = vmatmul.mubr.bf16.gmra.mrb[4].mxu1 %v2958_v3 }
 0x14b   :  { %2456 = vmatprep.mubr.bf16.mxu1 %v2963_v4 }
 0x152   :  { %2457 = vmatmul.mubr.bf16.gmra.mrb[8].mxu1 %v2968_v5 }
 0x153   :  { %2460 = vmatprep.mubr.bf16.mxu1 %v2973_v6 }
 0x15a   :  { %2461 = vmatmul.mubr.bf16.gmra.mrb[12].mxu1 %v2978_v7 }
 0x15b   :  { %2512 = vmatprep.mubr.bf16.mxu1 %v2943_v0 }
 0x215   :  { %v2450_v51 = vpop.f32.mrb[0].mxu1 }
 0x216   :  { %v421_v52 = vadd.f32 %v2450_v51, %v2216_v50  ;;  %v412_v53 = vpop.f32.mrb[1].mxu1 }
 0x217   :  { %v413_v54 = vadd.f32 %v2216_v50, %v412_v53  ;;  %v2451_v55 = vpop.f32.mrb[2].mxu1 }
 0x218   :  { %v415_v56 = vpop.f32.mrb[3].mxu1  ;;  %479 = vadd.xlane.f32.xlu1 %v421_v52  ;;  %v424_v57 = vadd.f32 %v2451_v55, %v2216_v50 }
 0x219   :  { %475 = vadd.xlane.f32.xlu0 %v413_v54  ;;  %v416_v58 = vadd.f32 %v2216_v50, %v415_v56 }
 0x21c   :  { %481 = vadd.xlane.f32.xlu1 %v424_v57 }
 0x21d   :  { %v2454_v59 = vpop.f32.mrb[4].mxu1  ;;  %477 = vadd.xlane.f32.xlu0 %v416_v58 }
 0x21e   :  { %v428_v60 = vpop.f32.mrb[5].mxu1  ;;  %v437_v9 = vadd.f32 %v2454_v59, %v2216_v50 }
 0x21f   :  { %v429_v61 = vadd.f32 %v2216_v50, %v428_v60  ;;  %v2455_v62 = vpop.f32.mrb[6].mxu1 }
 0x220   :  { %v431_v63 = vpop.f32.mrb[7].mxu1  ;;  %v3043_v11 = vadd.f32 %v2455_v62, %v2216_v50 }
 0x221   :  { %v432_v8 = vadd.f32 %v2216_v50, %v431_v63  ;;  %483 = vadd.xlane.f32.xlu0 %v429_v61 }
 0x223   :  { %485 = vadd.xlane.f32.xlu1 %v432_v8 }
 0x225   :  { %v2458_v12 = vpop.f32.mrb[8].mxu1  ;;  %487 = vadd.xlane.f32.xlu0 %v437_v9 }
 0x226   :  { %v444_v13 = vpop.f32.mrb[9].mxu1  ;;  %v3051_v18 = vadd.f32 %v2458_v12, %v2216_v50 }
 0x227   :  { %v3045_v14 = vadd.f32 %v2216_v50, %v444_v13  ;;  %v2459_v15 = vpop.f32.mrb[10].mxu1  ;;  %489 = vadd.xlane.f32.xlu1 %v3043_v11 }
 0x228   :  { %v447_v16 = vpop.f32.mrb[11].mxu1  ;;  %v3054_v19 = vadd.f32 %v2459_v15, %v2216_v50 }
 0x229   :  { %v3048_v17 = vadd.f32 %v2216_v50, %v447_v16  ;;  %491 = vadd.xlane.f32.xlu0 %v3045_v14 }
 0x22b   :  { %493 = vadd.xlane.f32.xlu1 %v3048_v17 }
 0x22d   :  { %v2462_v20 = vpop.f32.mrb[12].mxu1  ;;  %495 = vadd.xlane.f32.xlu0 %v3051_v18 }
 0x22e   :  { %v460_v21 = vpop.f32.mrb[13].mxu1  ;;  %v3063_v26 = vadd.f32 %v2462_v20, %v2216_v50 }
 0x22f   :  { %v3057_v22 = vadd.f32 %v2216_v50, %v460_v21  ;;  %v2463_v23 = vpop.f32.mrb[14].mxu1  ;;  %497 = vadd.xlane.f32.xlu1 %v3054_v19 }
 0x230   :  { %v463_v24 = vpop.f32.mrb[15].mxu1  ;;  %v3066_v27 = vadd.f32 %v2463_v23, %v2216_v50 }
 0x231   :  { %v3060_v25 = vadd.f32 %v2216_v50, %v463_v24  ;;  %499 = vadd.xlane.f32.xlu0 %v3057_v22 }
 0x233   :  { %501 = vadd.xlane.f32.xlu1 %v3060_v25 }
 0x235   :  { %503 = vadd.xlane.f32.xlu0 %v3063_v26 }
 0x237   :  { %505 = vadd.xlane.f32.xlu1 %v3066_v27 }
 0x2a5   :  { %v480_v28 = vpop.xlane.xlu1 %479 }
 0x2a6   :  { %v509_v29 = vmul.f32 0.03125, %v480_v28  ;;  %v476_v30 = vpop.xlane.xlu0 %475 }
 0x2a7   :  { %v507_v31 = vmul.f32 0.03125, %v476_v30 }
 0x2a8   :  { %v3070_v32 = vsub.f32 %v421_v52, %v509_v29 }
 0x2a9   :  { %v3072_v33 = vsub.f32 %v413_v54, %v507_v31  ;;  %v482_v34 = vpop.xlane.xlu1 %481 }
 0x2aa   :  { %v510_v35 = vmul.f32 0.03125, %v482_v34  ;;  %v478_v36 = vpop.xlane.xlu0 %477  ;;  %v541_v42 = vmul.f32 %v3070_v32, %v3070_v32 }
 0x2ab   :  { %v508_v37 = vmul.f32 0.03125, %v478_v36  ;;  %v539_v38 = vmul.f32 %v3072_v33, %v3072_v33 }
 0x2ac   :  { %v3076_v39 = vsub.f32 %v424_v57, %v510_v35  ;;  %v559_v50 = vsel %vm125_vm0, %v541_v42, 0.0 }
 0x2ad   :  { %v3078_v40 = vsub.f32 %v416_v58, %v508_v37  ;;  %v557_v41 = vsel %vm125_vm0, %v539_v38, 0.0 }
 0x2ae   :  { %573 = vadd.xlane.f32.xlu0 %v557_v41  ;;  %v484_v43 = vpop.xlane.xlu0 %483  ;;  %v542_v47 = vmul.f32 %v3076_v39, %v3076_v39 }
 0x2af   :  { %v511_v44 = vmul.f32 0.03125, %v484_v43  ;;  %v540_v45 = vmul.f32 %v3078_v40, %v3078_v40  ;;  %v2691_v43 = vld [vmem:[%s3823_s6 + $0x8] sm:$0xff]  }
 0x2b0   :  { %v486_v46 = vpop.xlane.xlu1 %485  ;;  %v560_v57 = vsel %vm125_vm0, %v542_v47, 0.0 }
 0x2b1   :  { %v3088_v48 = vsub.f32 %v429_v61, %v511_v44  ;;  %v512_v49 = vmul.f32 0.03125, %v486_v46  ;;  %v558_v51 = vsel %vm125_vm0, %v540_v45, 0.0 }
 0x2b2   :  { %577 = vadd.xlane.f32.xlu0 %v559_v50  ;;  %575 = vadd.xlane.f32.xlu1 %v558_v51  ;;  %v488_v52 = vpop.xlane.xlu0 %487 }
 0x2b3   :  { %v3094_v53 = vsub.f32 %v432_v8, %v512_v49  ;;  %v513_v54 = vmul.f32 0.03125, %v488_v52  ;;  %v543_v55 = vmul.f32 %v3088_v48, %v3088_v48 }
 0x2b4   :  { %v490_v56 = vpop.xlane.xlu1 %489 }
 0x2b5   :  { %v3100_v58 = vsub.f32 %v437_v9, %v513_v54  ;;  %v514_v59 = vmul.f32 0.03125, %v490_v56  ;;  %v561_v60 = vsel %vm125_vm0, %v543_v55, 0.0  ;;  %v544_v61 = vmul.f32 %v3094_v53, %v3094_v53  ;;  %v2692_v54 = vld [vmem:[%s3823_s6 + $0x10] sm:$0xff]  }
 0x2b6   :  { %579 = vadd.xlane.f32.xlu1 %v560_v57  ;;  %581 = vadd.xlane.f32.xlu0 %v561_v60  ;;  %v492_v62 = vpop.xlane.xlu0 %491 }
 0x2b7   :  { %v3107_v63 = vsub.f32 %v3043_v11, %v514_v59  ;;  %v515_v8 = vmul.f32 0.03125, %v492_v62  ;;  %v545_v12 = vmul.f32 %v3100_v58, %v3100_v58  ;;  %v562_v9 = vsel %vm125_vm0, %v544_v61, 0.0 }
 0x2b8   :  { %v494_v13 = vpop.xlane.xlu1 %493 }
 0x2b9   :  { %v3114_v15 = vsub.f32 %v3045_v14, %v515_v8  ;;  %v516_v16 = vmul.f32 0.03125, %v494_v13  ;;  %v563_v20 = vsel %vm125_vm0, %v545_v12, 0.0  ;;  %v546_v21 = vmul.f32 %v3107_v63, %v3107_v63  ;;  %v2690_v14 = vld [vmem:[%s3823_s6] sm:$0xff]   ;;  %v2695_v13 = vld [vmem:[%s3823_s6 + $0x28] sm:$0xff]  }
 0x2ba   :  { %583 = vadd.xlane.f32.xlu1 %v562_v9  ;;  %585 = vadd.xlane.f32.xlu0 %v563_v20  ;;  %v496_v11 = vpop.xlane.xlu0 %495  ;;  %v2696_v9 = vld [vmem:[%s3823_s6 + $0x30] sm:$0xff]  }
 0x2bb   :  { %v3121_v23 = vsub.f32 %v3048_v17, %v516_v16  ;;  %v517_v24 = vmul.f32 0.03125, %v496_v11  ;;  %v547_v28 = vmul.f32 %v3114_v15, %v3114_v15  ;;  %v564_v30 = vsel %vm125_vm0, %v546_v21, 0.0  ;;  %2464 = vmatprep.subr.bf16.mxu0 %v2690_v14  ;;  %v2697_v16 = vld [vmem:[%s3823_s6 + $0x38] sm:$0xff]  }
 0x2bc   :  { %v498_v29 = vpop.xlane.xlu1 %497  ;;  %2465 = vmatpush3.bf16.msra.mxu0 %v2690_v14 }
 0x2bd   :  { %v3131_v31 = vsub.f32 %v3051_v18, %v517_v24  ;;  %v518_v34 = vmul.f32 0.03125, %v498_v29  ;;  %v565_v17 = vsel %vm125_vm0, %v547_v28, 0.0  ;;  %v548_v35 = vmul.f32 %v3121_v23, %v3121_v23  ;;  %2466 = vmatprep.subr.bf16.mxu0 %v2691_v43 }
 0x2be   :  { %587 = vadd.xlane.f32.xlu1 %v564_v30  ;;  %589 = vadd.xlane.f32.xlu0 %v565_v17  ;;  %v500_v36 = vpop.xlane.xlu0 %499 }
 0x2bf   :  { %v3138_v37 = vsub.f32 %v3054_v19, %v518_v34  ;;  %v519_v38 = vmul.f32 0.03125, %v500_v36  ;;  %v549_v41 = vmul.f32 %v3131_v31, %v3131_v31  ;;  %v566_v42 = vsel %vm125_vm0, %v548_v35, 0.0 }
 0x2c0   :  { %v502_v18 = vpop.xlane.xlu1 %501  ;;  %2467 = vmatpush3.bf16.msra.mxu0 %v2691_v43 }
 0x2c1   :  { %v3148_v44 = vsub.f32 %v3057_v22, %v519_v38  ;;  %v520_v45 = vmul.f32 0.03125, %v502_v18  ;;  %v567_v19 = vsel %vm125_vm0, %v549_v41, 0.0  ;;  %v550_v46 = vmul.f32 %v3138_v37, %v3138_v37  ;;  %2468 = vmatprep.subr.bf16.mxu0 %v2692_v54 }
 0x2c2   :  { %591 = vadd.xlane.f32.xlu1 %v566_v42  ;;  %593 = vadd.xlane.f32.xlu0 %v567_v19  ;;  %v504_v47 = vpop.xlane.xlu0 %503 }
 0x2c3   :  { %v3155_v49 = vsub.f32 %v3060_v25, %v520_v45  ;;  %v521_v50 = vmul.f32 0.03125, %v504_v47  ;;  %v551_v51 = vmul.f32 %v3148_v44, %v3148_v44  ;;  %v568_v52 = vsel %vm125_vm0, %v550_v46, 0.0 }
 0x2c4   :  { %v506_v22 = vpop.xlane.xlu1 %505  ;;  %2469 = vmatpush3.bf16.msra.mxu0 %v2692_v54 }
 0x2c5   :  { %v3165_v55 = vsub.f32 %v3063_v26, %v521_v50  ;;  %v522_v56 = vmul.f32 0.03125, %v506_v22  ;;  %v569_v25 = vsel %vm125_vm0, %v551_v51, 0.0  ;;  %v552_v57 = vmul.f32 %v3155_v49, %v3155_v49  ;;  %v2693_v26 = vld [vmem:[%s3823_s6 + $0x18] sm:$0xff]   ;;  %v3202_v51 = vld [vmem:[%s3852_s23] ss:$0 sm:$0xff] }
 0x2c6   :  { %595 = vadd.xlane.f32.xlu1 %v568_v52  ;;  %597 = vadd.xlane.f32.xlu0 %v569_v25 }
 0x2c7   :  { %v3172_v59 = vsub.f32 %v3066_v27, %v522_v56  ;;  %v553_v60 = vmul.f32 %v3165_v55, %v3165_v55  ;;  %v570_v61 = vsel %vm125_vm0, %v552_v57, 0.0  ;;  %2470 = vmatprep.subr.bf16.mxu0 %v2693_v26  ;;  %v2694_v27 = vld [vmem:[%s3823_s6 + $0x20] sm:$0xff]  }
 0x2c8   :  { %2471 = vmatpush3.bf16.msra.mxu0 %v2693_v26  ;;  %v3208_v57 = vld [vmem:[%s3853_s25] ss:$0 sm:$0xff] }
 0x2c9   :  { %v571_v62 = vsel %vm125_vm0, %v553_v60, 0.0  ;;  %v554_v8 = vmul.f32 %v3172_v59, %v3172_v59  ;;  %2472 = vmatprep.subr.bf16.mxu0 %v2694_v27 }
 0x2ca   :  { %599 = vadd.xlane.f32.xlu1 %v570_v61  ;;  %601 = vadd.xlane.f32.xlu0 %v571_v62 }
 0x2cb   :  { %v572_v12 = vsel %vm125_vm0, %v554_v8, 0.0 }
 0x2cc   :  { %2473 = vmatpush3.bf16.msra.mxu0 %v2694_v27 }
 0x2cd   :  { %2474 = vmatprep.subr.bf16.mxu0 %v2695_v13 }
 0x2ce   :  { %603 = vadd.xlane.f32.xlu1 %v572_v12 }
 0x2d0   :  { %2475 = vmatpush3.bf16.msra.mxu0 %v2695_v13 }
 0x2d1   :  { %2476 = vmatprep.subr.bf16.mxu0 %v2696_v9 }
 0x2d4   :  { %2477 = vmatpush3.bf16.msra.mxu0 %v2696_v9 }
 0x2d5   :  { %2478 = vmatprep.subr.bf16.mxu0 %v2697_v16 }
 0x2d8   :  { %2479 = vmatpush3.bf16.msra.mxu0 %v2697_v16 }
 0x33b   :  { %v574_v20 = vpop.xlane.xlu0 %573 }
 0x33c   :  { %v605_v21 = vmul.f32 0.03125, %v574_v20 }
 0x33e   :  { %v621_v11 = vadd.f32 1e-05, %v605_v21 }
 0x33f   :  { %v576_v24 = vpop.xlane.xlu1 %575  ;;  %v578_v28 = vpop.xlane.xlu0 %577 }
 0x340   :  { %2730 = vrsqrt.f32 %v621_v11  ;;  %v606_v14 = vmul.f32 0.03125, %v576_v24  ;;  %v607_v29 = vmul.f32 0.03125, %v578_v28 }
 0x342   :  { %v622_v30 = vadd.f32 1e-05, %v606_v14  ;;  %v623_v34 = vadd.f32 1e-05, %v607_v29 }
 0x343   :  { %v580_v17 = vpop.xlane.xlu1 %579  ;;  %v582_v35 = vpop.xlane.xlu0 %581 }
 0x344   :  { %2732 = vrsqrt.f32 %v622_v30  ;;  %v608_v36 = vmul.f32 0.03125, %v580_v17  ;;  %v609_v38 = vmul.f32 0.03125, %v582_v35 }
 0x345   :  { %2734 = vrsqrt.f32 %v623_v34 }
 0x346   :  { %v624_v41 = vadd.f32 1e-05, %v608_v36  ;;  %v625_v18 = vadd.f32 1e-05, %v609_v38 }
 0x347   :  { %v584_v42 = vpop.xlane.xlu1 %583  ;;  %v586_v43 = vpop.xlane.xlu0 %585 }
 0x348   :  { %2736 = vrsqrt.f32 %v624_v41  ;;  %v610_v45 = vmul.f32 0.03125, %v584_v42  ;;  %v611_v19 = vmul.f32 0.03125, %v586_v43 }
 0x349   :  { %2738 = vrsqrt.f32 %v625_v18 }
 0x34a   :  { %v2731_v46 = vpop.eup %2730  ;;  %v626_v47 = vadd.f32 1e-05, %v610_v45  ;;  %v627_v50 = vadd.f32 1e-05, %v611_v19 }
 0x34b   :  { %v588_v22 = vpop.xlane.xlu1 %587  ;;  %v590_v52 = vpop.xlane.xlu0 %589  ;;  %v653_v54 = vmul.f32 %v2731_v46, %v3072_v33 }
 0x34c   :  { %2740 = vrsqrt.f32 %v626_v47  ;;  %v612_v56 = vmul.f32 0.03125, %v588_v22  ;;  %v613_v25 = vmul.f32 0.03125, %v590_v52 }
 0x34d   :  { %2742 = vrsqrt.f32 %v627_v50  ;;  %v676_v60 = vmul.f32 %v3202_v51, %v653_v54 }
 0x34e   :  { %v2733_v26 = vpop.eup %2732  ;;  %v628_v61 = vadd.f32 1e-05, %v612_v56  ;;  %v629_v62 = vadd.f32 1e-05, %v613_v25 }
 0x34f   :  { %v2735_v8 = vpop.eup %2734  ;;  %v592_v27 = vpop.xlane.xlu1 %591  ;;  %v654_v13 = vmul.f32 %v2733_v26, %v3078_v40  ;;  %v699_v33 = vadd.f32 %v3208_v57, %v676_v60 }
 0x350   :  { %v594_v12 = vpop.xlane.xlu0 %593  ;;  %2744 = vrsqrt.f32 %v628_v61  ;;  %v614_v9 = vmul.f32 0.03125, %v592_v27  ;;  %v655_v20 = vmul.f32 %v2735_v8, %v3070_v32 }
 0x351   :  { %v615_v16 = vmul.f32 0.03125, %v594_v12  ;;  %2746 = vrsqrt.f32 %v629_v62  ;;  %v677_v21 = vmul.f32 %v3202_v51, %v654_v13  ;;  %v715_v17 = vmax.f32 %v699_v33, 0.0 }
 0x352   :  { %v2737_v11 = vpop.eup %2736  ;;  %v630_v24 = vadd.f32 1e-05, %v614_v9  ;;  %v678_v14 = vmul.f32 %v3202_v51, %v655_v20 }
 0x353   :  { %v631_v28 = vadd.f32 1e-05, %v615_v16  ;;  %v2739_v29 = vpop.eup %2738  ;;  %v596_v30 = vpop.xlane.xlu1 %595  ;;  %v700_v40 = vadd.f32 %v3208_v57, %v677_v21  ;;  %v656_v35 = vmul.f32 %v2737_v11, %v3076_v39 }
 0x354   :  { %v598_v34 = vpop.xlane.xlu0 %597  ;;  %2748 = vrsqrt.f32 %v630_v24  ;;  %v616_v36 = vmul.f32 0.03125, %v596_v30  ;;  %v701_v32 = vadd.f32 %v3208_v57, %v678_v14  ;;  %v657_v42 = vmul.f32 %v2739_v29, %v3088_v48 }
 0x355   :  { %v617_v38 = vmul.f32 0.03125, %v598_v34  ;;  %2750 = vrsqrt.f32 %v631_v28  ;;  %v716_v41 = vmax.f32 %v700_v40, 0.0  ;;  %v679_v18 = vmul.f32 %v3202_v51, %v656_v35 }
 0x356   :  { %v2741_v43 = vpop.eup %2740  ;;  %v632_v45 = vadd.f32 1e-05, %v616_v36  ;;  %v717_v46 = vmax.f32 %v701_v32, 0.0  ;;  %v680_v56 = vmul.f32 %v3202_v51, %v657_v42 }
 0x357   :  { %v633_v19 = vadd.f32 1e-05, %v617_v38  ;;  %v2743_v47 = vpop.eup %2742  ;;  %v600_v50 = vpop.xlane.xlu1 %599  ;;  %v731_v52 = vpack.c.bf16 %v716_v41, %v715_v17  ;;  %v702_v39 = vadd.f32 %v3208_v57, %v679_v18  ;;  %v658_v54 = vmul.f32 %v2741_v43, %v3094_v53 }
 0x358   :  { %v602_v22 = vpop.xlane.xlu0 %601  ;;  %2752 = vrsqrt.f32 %v632_v45  ;;  %v618_v25 = vmul.f32 0.03125, %v600_v50  ;;  %v659_v26 = vmul.f32 %v2743_v47, %v3100_v58  ;;  %v703_v62 = vadd.f32 %v3208_v57, %v680_v56 }
 0x359   :  { %v619_v60 = vmul.f32 0.03125, %v602_v22  ;;  %2754 = vrsqrt.f32 %v633_v19  ;;  %2480 = vmatprep.mubr.bf16.mxu0 %v731_v52  ;;  %v718_v48 = vmax.f32 %v702_v39, 0.0  ;;  %v681_v61 = vmul.f32 %v3202_v51, %v658_v54 }
 0x35a   :  { %v2745_v8 = vpop.eup %2744  ;;  %v634_v27 = vadd.f32 1e-05, %v618_v25  ;;  %v682_v13 = vmul.f32 %v3202_v51, %v659_v26  ;;  %v719_v21 = vmax.f32 %v703_v62, 0.0 }
 0x35b   :  { %v635_v12 = vadd.f32 1e-05, %v619_v60  ;;  %v2747_v53 = vpop.eup %2746  ;;  %v604_v33 = vpop.xlane.xlu1 %603  ;;  %v732_v9 = vpack.c.bf16 %v718_v48, %v717_v46  ;;  %v704_v16 = vadd.f32 %v3208_v57, %v681_v61  ;;  %v660_v20 = vmul.f32 %v2745_v8, %v3107_v63 }
 0x35c   :  { %2756 = vrsqrt.f32 %v634_v27  ;;  %v620_v58 = vmul.f32 0.03125, %v604_v33  ;;  %v661_v11 = vmul.f32 %v2747_v53, %v3114_v15  ;;  %v705_v14 = vadd.f32 %v3208_v57, %v682_v13 }
 0x35d   :  { %2758 = vrsqrt.f32 %v635_v12  ;;  %2481 = vmatmul.mubr.bf16.vlgmr.msra.gmra.mrb[16].mxu0 %v732_v9  ;;  %v720_v24 = vmax.f32 %v704_v16, 0.0  ;;  %v683_v28 = vmul.f32 %v3202_v51, %v660_v20 }
 0x35e   :  { %v2749_v29 = vpop.eup %2748  ;;  %v636_v30 = vadd.f32 1e-05, %v620_v58  ;;  %v684_v34 = vmul.f32 %v3202_v51, %v661_v11  ;;  %v721_v36 = vmax.f32 %v705_v14, 0.0 }
 0x35f   :  { %v2751_v40 = vpop.eup %2750  ;;  %v733_v17 = vpack.c.bf16 %v720_v24, %v719_v21  ;;  %v706_v63 = vadd.f32 %v3208_v57, %v683_v28  ;;  %v662_v35 = vmul.f32 %v2749_v29, %v3121_v23 }
 0x360   :  { %2760 = vrsqrt.f32 %v636_v30  ;;  %v663_v15 = vmul.f32 %v2751_v40, %v3131_v31  ;;  %v707_v41 = vadd.f32 %v3208_v57, %v684_v34 }
 0x361   :  { %2484 = vmatprep.mubr.bf16.mxu0 %v733_v17  ;;  %v722_v38 = vmax.f32 %v706_v63, 0.0  ;;  %v685_v32 = vmul.f32 %v3202_v51, %v662_v35 }
 0x362   :  { %v2753_v18 = vpop.eup %2752  ;;  %v686_v42 = vmul.f32 %v3202_v51, %v663_v15  ;;  %v723_v31 = vmax.f32 %v707_v41, 0.0 }
 0x363   :  { %v2755_v43 = vpop.eup %2754  ;;  %v734_v45 = vpack.c.bf16 %v722_v38, %v721_v36  ;;  %v708_v19 = vadd.f32 %v3208_v57, %v685_v32  ;;  %v664_v46 = vmul.f32 %v2753_v18, %v3138_v37 }
 0x364   :  { %v665_v23 = vmul.f32 %v2755_v43, %v3148_v44  ;;  %v709_v22 = vadd.f32 %v3208_v57, %v686_v42 }
 0x365   :  { %2485 = vmatmul.mubr.bf16.gmra.mrb[20].mxu0 %v734_v45  ;;  %v724_v47 = vmax.f32 %v708_v19, 0.0  ;;  %v687_v50 = vmul.f32 %v3202_v51, %v664_v46  ;;  %v2227_v46 = vld [vmem:[%s3824_s7] ss:$0 sm:$0xff] }
 0x366   :  { %v2757_v52 = vpop.eup %2756  ;;  %v688_v39 = vmul.f32 %v3202_v51, %v665_v23  ;;  %v725_v44 = vmax.f32 %v709_v22, 0.0 }
 0x367   :  { %v2759_v54 = vpop.eup %2758  ;;  %v735_v56 = vpack.c.bf16 %v724_v47, %v723_v31  ;;  %v710_v25 = vadd.f32 %v3208_v57, %v687_v50  ;;  %v666_v60 = vmul.f32 %v2757_v52, %v3155_v49 }
 0x368   :  { %v667_v37 = vmul.f32 %v2759_v54, %v3165_v55  ;;  %v711_v61 = vadd.f32 %v3208_v57, %v688_v39 }
 0x369   :  { %2488 = vmatprep.mubr.bf16.mxu0 %v735_v56  ;;  %v726_v26 = vmax.f32 %v710_v25, 0.0  ;;  %v689_v48 = vmul.f32 %v3202_v51, %v666_v60 }
 0x36a   :  { %v2761_v62 = vpop.eup %2760  ;;  %v690_v8 = vmul.f32 %v3202_v51, %v667_v37  ;;  %v727_v53 = vmax.f32 %v711_v61, 0.0 }
 0x36b   :  { %v736_v27 = vpack.c.bf16 %v726_v26, %v725_v44  ;;  %v712_v12 = vadd.f32 %v3208_v57, %v689_v48  ;;  %v668_v13 = vmul.f32 %v2761_v62, %v3172_v59 }
 0x36c   :  { %v713_v33 = vadd.f32 %v3208_v57, %v690_v8 }
 0x36d   :  { %2489 = vmatmul.mubr.bf16.gmra.mrb[24].mxu0 %v736_v27  ;;  %v728_v49 = vmax.f32 %v712_v12, 0.0  ;;  %v691_v55 = vmul.f32 %v3202_v51, %v668_v13 }
 0x36e   :  { %v729_v20 = vmax.f32 %v713_v33, 0.0 }
 0x36f   :  { %v737_v9 = vpack.c.bf16 %v728_v49, %v727_v53  ;;  %v714_v16 = vadd.f32 %v3208_v57, %v691_v55 }
 0x371   :  { %2492 = vmatprep.mubr.bf16.mxu0 %v737_v9  ;;  %v730_v58 = vmax.f32 %v714_v16, 0.0 }
 0x373   :  { %v738_v21 = vpack.c.bf16 %v730_v58, %v729_v20 }
 0x375   :  { %2493 = vmatmul.mubr.bf16.gmra.mrb[28].mxu0 %v738_v21 }
 0x430   :  { %v2482_v11 = vpop.f32.mrb[16].mxu0 }
 0x431   :  { %v837_v24 = vpop.f32.mrb[17].mxu0 }
 0x432   :  { %v2483_v28 = vpop.f32.mrb[18].mxu0 }
 0x433   :  { %v901_v14 = vpack.c.bf16 %v2483_v28, %v2482_v11  ;;  %v840_v59 = vpop.f32.mrb[19].mxu0 }
 0x434   :  { %v900_v29 = vpack.c.bf16 %v840_v59, %v837_v24  ;;  %v2698_v24 = vld [vmem:[%s3827_s10] sm:$0xff]  }
 0x435   :  { %2528 = vmatprep.subr.bf16.mxu0 %v2698_v24 }
 0x436   :  { %2496 = vmatprep.subr.bf16.mxu1 %v900_v29  ;;  %2529 = vmatpush3.bf16.msra.mxu0 %v2698_v24 }
 0x437   :  { %2497 = vmatpush3.bf16.msra.mxu1 %v900_v29 }
 0x438   :  { %v2486_v30 = vpop.f32.mrb[20].mxu0  ;;  %2498 = vmatprep.subr.bf16.mxu1 %v901_v14 }
 0x439   :  { %v853_v51 = vpop.f32.mrb[21].mxu0 }
 0x43a   :  { %v2487_v34 = vpop.f32.mrb[22].mxu0 }
 0x43b   :  { %v903_v40 = vpack.c.bf16 %v2487_v34, %v2486_v30  ;;  %v856_v17 = vpop.f32.mrb[23].mxu0  ;;  %2499 = vmatpush3.bf16.msra.mxu1 %v901_v14 }
 0x43c   :  { %v902_v57 = vpack.c.bf16 %v856_v17, %v853_v51 }
 0x43e   :  { %2500 = vmatprep.subr.bf16.mxu1 %v902_v57 }
 0x43f   :  { %2501 = vmatpush3.bf16.msra.mxu1 %v902_v57 }
 0x440   :  { %v2490_v63 = vpop.f32.mrb[24].mxu0  ;;  %2502 = vmatprep.subr.bf16.mxu1 %v903_v40 }
 0x441   :  { %v869_v35 = vpop.f32.mrb[25].mxu0 }
 0x442   :  { %v2491_v15 = vpop.f32.mrb[26].mxu0 }
 0x443   :  { %v905_v36 = vpack.c.bf16 %v2491_v15, %v2490_v63  ;;  %v872_v38 = vpop.f32.mrb[27].mxu0  ;;  %2503 = vmatpush3.bf16.msra.mxu1 %v903_v40 }
 0x444   :  { %v904_v32 = vpack.c.bf16 %v872_v38, %v869_v35 }
 0x446   :  { %2504 = vmatprep.subr.bf16.mxu1 %v904_v32 }
 0x447   :  { %2505 = vmatpush3.bf16.msra.mxu1 %v904_v32 }
 0x448   :  { %v2494_v41 = vpop.f32.mrb[28].mxu0  ;;  %2506 = vmatprep.subr.bf16.mxu1 %v905_v36 }
 0x449   :  { %v885_v18 = vpop.f32.mrb[29].mxu0 }
 0x44a   :  { %v2495_v42 = vpop.f32.mrb[30].mxu0 }
 0x44b   :  { %v907_v43 = vpack.c.bf16 %v2495_v42, %v2494_v41  ;;  %v888_v45 = vpop.f32.mrb[31].mxu0  ;;  %2507 = vmatpush3.bf16.msra.mxu1 %v905_v36 }
 0x44c   :  { %v906_v19 = vpack.c.bf16 %v888_v45, %v885_v18 }
 0x44e   :  { %2508 = vmatprep.subr.bf16.mxu1 %v906_v19 }
 0x44f   :  { %2509 = vmatpush3.bf16.msra.mxu1 %v906_v19 }
 0x450   :  { %2510 = vmatprep.subr.bf16.mxu1 %v907_v43 }
 0x453   :  { %2511 = vmatpush3.bf16.msra.mxu1 %v907_v43 }
 0x456   :  { %2513 = vmatmul.mubr.bf16.vlgmr.msra.gmra.mrb[16].mxu1 %v2948_v1 }
 0x457   :  { %2516 = vmatprep.mubr.bf16.mxu1 %v2953_v2 }
 0x45e   :  { %2517 = vmatmul.mubr.bf16.gmra.mrb[20].mxu1 %v2958_v3 }
 0x45f   :  { %2520 = vmatprep.mubr.bf16.mxu1 %v2963_v4 }
 0x466   :  { %2521 = vmatmul.mubr.bf16.gmra.mrb[24].mxu1 %v2968_v5 }
 0x467   :  { %2524 = vmatprep.mubr.bf16.mxu1 %v2973_v6 }
 0x46e   :  { %2525 = vmatmul.mubr.bf16.gmra.mrb[28].mxu1 %v2978_v7 }
 0x46f   :  { %2576 = vmatprep.mubr.bf16.mxu1 %v2943_v0 }
 0x529   :  { %v2514_v23 = vpop.f32.mrb[16].mxu1 }
 0x52a   :  { %v949_v31 = vpop.f32.mrb[17].mxu1  ;;  %v958_v39 = vadd.f32 %v2514_v23, %v2227_v46 }
 0x52b   :  { %v950_v47 = vadd.f32 %v2227_v46, %v949_v31  ;;  %v2515_v50 = vpop.f32.mrb[18].mxu1 }
 0x52c   :  { %v952_v22 = vpop.f32.mrb[19].mxu1  ;;  %v961_v54 = vadd.f32 %v2515_v50, %v2227_v46 }
 0x52d   :  { %v953_v52 = vadd.f32 %v2227_v46, %v952_v22  ;;  %1012 = vadd.xlane.f32.xlu0 %v950_v47 }
 0x52f   :  { %1014 = vadd.xlane.f32.xlu1 %v953_v52 }
 0x531   :  { %v2518_v56 = vpop.f32.mrb[20].mxu1  ;;  %1016 = vadd.xlane.f32.xlu0 %v958_v39 }
 0x532   :  { %v965_v25 = vpop.f32.mrb[21].mxu1  ;;  %v3268_v26 = vadd.f32 %v2518_v56, %v2227_v46 }
 0x533   :  { %v966_v60 = vadd.f32 %v2227_v46, %v965_v25  ;;  %v2519_v37 = vpop.f32.mrb[22].mxu1  ;;  %1018 = vadd.xlane.f32.xlu1 %v961_v54 }
 0x534   :  { %v968_v0 = vpop.f32.mrb[23].mxu1  ;;  %v3270_v48 = vadd.f32 %v2519_v37, %v2227_v46 }
 0x535   :  { %v969_v44 = vadd.f32 %v2227_v46, %v968_v0  ;;  %1020 = vadd.xlane.f32.xlu0 %v966_v60 }
 0x537   :  { %1022 = vadd.xlane.f32.xlu1 %v969_v44 }
 0x539   :  { %v2522_v61 = vpop.f32.mrb[24].mxu1  ;;  %1024 = vadd.xlane.f32.xlu0 %v3268_v26 }
 0x53a   :  { %v981_v62 = vpop.f32.mrb[25].mxu1  ;;  %v3279_v53 = vadd.f32 %v2522_v61, %v2227_v46 }
 0x53b   :  { %v3273_v8 = vadd.f32 %v2227_v46, %v981_v62  ;;  %v2523_v27 = vpop.f32.mrb[26].mxu1  ;;  %1026 = vadd.xlane.f32.xlu1 %v3270_v48 }
 0x53c   :  { %v984_v12 = vpop.f32.mrb[27].mxu1  ;;  %v3282_v49 = vadd.f32 %v2523_v27, %v2227_v46 }
 0x53d   :  { %v3276_v13 = vadd.f32 %v2227_v46, %v984_v12  ;;  %1028 = vadd.xlane.f32.xlu0 %v3273_v8 }
 0x53f   :  { %1030 = vadd.xlane.f32.xlu1 %v3276_v13 }
 0x541   :  { %v2526_v55 = vpop.f32.mrb[28].mxu1  ;;  %1032 = vadd.xlane.f32.xlu0 %v3279_v53 }
 0x542   :  { %v997_v33 = vpop.f32.mrb[29].mxu1  ;;  %v3291_v21 = vadd.f32 %v2526_v55, %v2227_v46 }
 0x543   :  { %v3285_v9 = vadd.f32 %v2227_v46, %v997_v33  ;;  %v2527_v16 = vpop.f32.mrb[30].mxu1  ;;  %1034 = vadd.xlane.f32.xlu1 %v3282_v49 }
 0x544   :  { %v1000_v20 = vpop.f32.mrb[31].mxu1  ;;  %v3294_v11 = vadd.f32 %v2527_v16, %v2227_v46 }
 0x545   :  { %v3288_v58 = vadd.f32 %v2227_v46, %v1000_v20  ;;  %1036 = vadd.xlane.f32.xlu0 %v3285_v9 }
 0x547   :  { %1038 = vadd.xlane.f32.xlu1 %v3288_v58 }
 0x549   :  { %1040 = vadd.xlane.f32.xlu0 %v3291_v21 }
 0x54b   :  { %1042 = vadd.xlane.f32.xlu1 %v3294_v11 }
 0x5ba   :  { %v1013_v28 = vpop.xlane.xlu0 %1012 }
 0x5bb   :  { %v1044_v14 = vmul.f32 0.03125, %v1013_v28 }
 0x5bc   :  { %v1015_v59 = vpop.xlane.xlu1 %1014 }
 0x5bd   :  { %v3301_v29 = vsub.f32 %v950_v47, %v1044_v14  ;;  %v1045_v30 = vmul.f32 0.03125, %v1015_v59 }
 0x5be   :  { %v1017_v51 = vpop.xlane.xlu0 %1016 }
 0x5bf   :  { %v3303_v34 = vsub.f32 %v953_v52, %v1045_v30  ;;  %v1046_v40 = vmul.f32 0.03125, %v1017_v51  ;;  %v1076_v17 = vmul.f32 %v3301_v29, %v3301_v29 }
 0x5c0   :  { %v1019_v57 = vpop.xlane.xlu1 %1018 }
 0x5c1   :  { %v3307_v63 = vsub.f32 %v958_v39, %v1046_v40  ;;  %v1047_v35 = vmul.f32 0.03125, %v1019_v57  ;;  %v1092_v15 = vsel %vm125_vm0, %v1076_v17, 0.0  ;;  %v1077_v36 = vmul.f32 %v3303_v34, %v3303_v34 }
 0x5c2   :  { %1108 = vadd.xlane.f32.xlu0 %v1092_v15  ;;  %v1021_v38 = vpop.xlane.xlu0 %1020 }
 0x5c3   :  { %v3313_v32 = vsub.f32 %v961_v54, %v1047_v35  ;;  %v1048_v41 = vmul.f32 0.03125, %v1021_v38  ;;  %v1093_v18 = vsel %vm125_vm0, %v1077_v36, 0.0  ;;  %v1078_v42 = vmul.f32 %v3307_v63, %v3307_v63  ;;  %v2699_v35 = vld [vmem:[%s3827_s10 + $0x8] sm:$0xff]  }
 0x5c4   :  { %1110 = vadd.xlane.f32.xlu1 %v1093_v18  ;;  %v1023_v43 = vpop.xlane.xlu1 %1022  ;;  %2530 = vmatprep.subr.bf16.mxu0 %v2699_v35 }
 0x5c5   :  { %v3319_v45 = vsub.f32 %v966_v60, %v1048_v41  ;;  %v1049_v19 = vmul.f32 0.03125, %v1023_v43  ;;  %v1094_v46 = vsel %vm125_vm0, %v1078_v42, 0.0  ;;  %v1079_v23 = vmul.f32 %v3313_v32, %v3313_v32  ;;  %2531 = vmatpush3.bf16.msra.mxu0 %v2699_v35 }
 0x5c6   :  { %1112 = vadd.xlane.f32.xlu0 %v1094_v46  ;;  %v1025_v31 = vpop.xlane.xlu0 %1024  ;;  %v2700_v46 = vld [vmem:[%s3827_s10 + $0x10] sm:$0xff]  }
 0x5c7   :  { %v3325_v47 = vsub.f32 %v969_v44, %v1049_v19  ;;  %v1050_v50 = vmul.f32 0.03125, %v1025_v31  ;;  %v1095_v22 = vsel %vm125_vm0, %v1079_v23, 0.0  ;;  %v1080_v52 = vmul.f32 %v3319_v45, %v3319_v45  ;;  %2532 = vmatprep.subr.bf16.mxu0 %v2700_v46 }
 0x5c8   :  { %1114 = vadd.xlane.f32.xlu1 %v1095_v22  ;;  %v1027_v39 = vpop.xlane.xlu1 %1026 }
 0x5c9   :  { %v3332_v54 = vsub.f32 %v3268_v26, %v1050_v50  ;;  %v1051_v56 = vmul.f32 0.03125, %v1027_v39  ;;  %v1096_v25 = vsel %vm125_vm0, %v1080_v52, 0.0  ;;  %v1081_v60 = vmul.f32 %v3325_v47, %v3325_v47  ;;  %2533 = vmatpush3.bf16.msra.mxu0 %v2700_v46 }
 0x5ca   :  { %1116 = vadd.xlane.f32.xlu0 %v1096_v25  ;;  %v1029_v37 = vpop.xlane.xlu0 %1028 }
 0x5cb   :  { %v3339_v0 = vsub.f32 %v3270_v48, %v1051_v56  ;;  %v1052_v44 = vmul.f32 0.03125, %v1029_v37  ;;  %v1097_v61 = vsel %vm125_vm0, %v1081_v60, 0.0  ;;  %v1082_v26 = vmul.f32 %v3332_v54, %v3332_v54  ;;  %v2701_v56 = vld [vmem:[%s3827_s10 + $0x18] sm:$0xff]   ;;  %v2702_v37 = vld [vmem:[%s3827_s10 + $0x20] sm:$0xff]  }
 0x5cc   :  { %1118 = vadd.xlane.f32.xlu1 %v1097_v61  ;;  %v1031_v62 = vpop.xlane.xlu1 %1030  ;;  %2534 = vmatprep.subr.bf16.mxu0 %v2701_v56  ;;  %v2704_v61 = vld [vmem:[%s3827_s10 + $0x30] sm:$0xff]  }
 0x5cd   :  { %v3346_v27 = vsub.f32 %v3273_v8, %v1052_v44  ;;  %v1053_v12 = vmul.f32 0.03125, %v1031_v62  ;;  %v1098_v55 = vsel %vm125_vm0, %v1082_v26, 0.0  ;;  %v1083_v48 = vmul.f32 %v3339_v0, %v3339_v0  ;;  %2535 = vmatpush3.bf16.msra.mxu0 %v2701_v56  ;;  %v2703_v44 = vld [vmem:[%s3827_s10 + $0x28] sm:$0xff]   ;;  %v2705_v26 = vld [vmem:[%s3827_s10 + $0x38] sm:$0xff]  }
 0x5ce   :  { %1120 = vadd.xlane.f32.xlu0 %v1098_v55  ;;  %v1033_v33 = vpop.xlane.xlu0 %1032  ;;  %2536 = vmatprep.subr.bf16.mxu0 %v2702_v37 }
 0x5cf   :  { %v3353_v16 = vsub.f32 %v3276_v13, %v1053_v12  ;;  %v1054_v20 = vmul.f32 0.03125, %v1033_v33  ;;  %v1099_v24 = vsel %vm125_vm0, %v1083_v48, 0.0  ;;  %v1084_v8 = vmul.f32 %v3346_v27, %v3346_v27 }
 0x5d0   :  { %1122 = vadd.xlane.f32.xlu1 %v1099_v24  ;;  %v1035_v28 = vpop.xlane.xlu1 %1034 }
 0x5d1   :  { %v3360_v14 = vsub.f32 %v3279_v53, %v1054_v20  ;;  %v1055_v59 = vmul.f32 0.03125, %v1035_v28  ;;  %v1100_v30 = vsel %vm125_vm0, %v1084_v8, 0.0  ;;  %v1085_v13 = vmul.f32 %v3353_v16, %v3353_v16  ;;  %2537 = vmatpush3.bf16.msra.mxu0 %v2702_v37 }
 0x5d2   :  { %1124 = vadd.xlane.f32.xlu0 %v1100_v30  ;;  %v1037_v51 = vpop.xlane.xlu0 %1036  ;;  %2538 = vmatprep.subr.bf16.mxu0 %v2703_v44 }
 0x5d3   :  { %v3367_v40 = vsub.f32 %v3282_v49, %v1055_v59  ;;  %v1056_v17 = vmul.f32 0.03125, %v1037_v51  ;;  %v1101_v57 = vsel %vm125_vm0, %v1085_v13, 0.0  ;;  %v1086_v53 = vmul.f32 %v3360_v14, %v3360_v14 }
 0x5d4   :  { %1126 = vadd.xlane.f32.xlu1 %v1101_v57  ;;  %v1039_v15 = vpop.xlane.xlu1 %1038 }
 0x5d5   :  { %v3377_v36 = vsub.f32 %v3285_v9, %v1056_v17  ;;  %v1057_v38 = vmul.f32 0.03125, %v1039_v15  ;;  %v1102_v49 = vsel %vm125_vm0, %v1086_v53, 0.0  ;;  %v1087_v41 = vmul.f32 %v3367_v40, %v3367_v40  ;;  %2539 = vmatpush3.bf16.msra.mxu0 %v2703_v44 }
 0x5d6   :  { %1128 = vadd.xlane.f32.xlu0 %v1102_v49  ;;  %v1041_v18 = vpop.xlane.xlu0 %1040  ;;  %2540 = vmatprep.subr.bf16.mxu0 %v2704_v61 }
 0x5d7   :  { %v3384_v42 = vsub.f32 %v3288_v58, %v1057_v38  ;;  %v1058_v43 = vmul.f32 0.03125, %v1041_v18  ;;  %v1103_v19 = vsel %vm125_vm0, %v1087_v41, 0.0  ;;  %v1088_v9 = vmul.f32 %v3377_v36, %v3377_v36 }
 0x5d8   :  { %1130 = vadd.xlane.f32.xlu1 %v1103_v19  ;;  %v1043_v23 = vpop.xlane.xlu1 %1042 }
 0x5d9   :  { %v3394_v31 = vsub.f32 %v3291_v21, %v1058_v43  ;;  %v1059_v50 = vmul.f32 0.03125, %v1043_v23  ;;  %v1104_v58 = vsel %vm125_vm0, %v1088_v9, 0.0  ;;  %v1089_v22 = vmul.f32 %v3384_v42, %v3384_v42  ;;  %2541 = vmatpush3.bf16.msra.mxu0 %v2704_v61  ;;  %v3431_v43 = vld [vmem:[%s3825_s8] ss:$0 sm:$0xff] }
 0x5da   :  { %1132 = vadd.xlane.f32.xlu0 %v1104_v58  ;;  %2542 = vmatprep.subr.bf16.mxu0 %v2705_v26 }
 0x5db   :  { %v3401_v52 = vsub.f32 %v3294_v11, %v1059_v50  ;;  %v1105_v39 = vsel %vm125_vm0, %v1089_v22, 0.0  ;;  %v1090_v21 = vmul.f32 %v3394_v31, %v3394_v31 }
 0x5dc   :  { %1134 = vadd.xlane.f32.xlu1 %v1105_v39  ;;  %v3437_v39 = vld [vmem:[%s3826_s9] ss:$0 sm:$0xff] }
 0x5dd   :  { %v1106_v25 = vsel %vm125_vm0, %v1090_v21, 0.0  ;;  %v1091_v60 = vmul.f32 %v3401_v52, %v3401_v52  ;;  %2543 = vmatpush3.bf16.msra.mxu0 %v2705_v26 }
 0x5de   :  { %1136 = vadd.xlane.f32.xlu0 %v1106_v25 }
 0x5df   :  { %v1107_v11 = vsel %vm125_vm0, %v1091_v60, 0.0 }
 0x5e0   :  { %1138 = vadd.xlane.f32.xlu1 %v1107_v11 }
 0x64f   :  { %v1109_v62 = vpop.xlane.xlu0 %1108 }
 0x650   :  { %v1140_v12 = vmul.f32 0.03125, %v1109_v62 }
 0x651   :  { %v1111_v55 = vpop.xlane.xlu1 %1110 }
 0x652   :  { %v1156_v48 = vadd.f32 1e-05, %v1140_v12  ;;  %v1141_v33 = vmul.f32 0.03125, %v1111_v55 }
 0x653   :  { %v1113_v20 = vpop.xlane.xlu0 %1112 }
 0x654   :  { %2762 = vrsqrt.f32 %v1156_v48  ;;  %v1157_v24 = vadd.f32 1e-05, %v1141_v33  ;;  %v1142_v8 = vmul.f32 0.03125, %v1113_v20 }
 0x655   :  { %v1115_v28 = vpop.xlane.xlu1 %1114 }
 0x656   :  { %2764 = vrsqrt.f32 %v1157_v24  ;;  %v1158_v59 = vadd.f32 1e-05, %v1142_v8  ;;  %v1143_v30 = vmul.f32 0.03125, %v1115_v28 }
 0x657   :  { %v1117_v13 = vpop.xlane.xlu0 %1116 }
 0x658   :  { %2766 = vrsqrt.f32 %v1158_v59  ;;  %v1159_v51 = vadd.f32 1e-05, %v1143_v30  ;;  %v1144_v17 = vmul.f32 0.03125, %v1117_v13 }
 0x659   :  { %v1119_v57 = vpop.xlane.xlu1 %1118 }
 0x65a   :  { %2768 = vrsqrt.f32 %v1159_v51  ;;  %v1160_v53 = vadd.f32 1e-05, %v1144_v17  ;;  %v1145_v35 = vmul.f32 0.03125, %v1119_v57 }
 0x65b   :  { %v1121_v15 = vpop.xlane.xlu0 %1120 }
 0x65c   :  { %2770 = vrsqrt.f32 %v1160_v53  ;;  %v1161_v38 = vadd.f32 1e-05, %v1145_v35  ;;  %v1146_v49 = vmul.f32 0.03125, %v1121_v15 }
 0x65d   :  { %v1123_v41 = vpop.xlane.xlu1 %1122 }
 0x65e   :  { %v2763_v18 = vpop.eup %2762  ;;  %2772 = vrsqrt.f32 %v1161_v38  ;;  %v1162_v19 = vadd.f32 1e-05, %v1146_v49  ;;  %v1147_v9 = vmul.f32 0.03125, %v1123_v41 }
 0x65f   :  { %v1125_v46 = vpop.xlane.xlu0 %1124  ;;  %v1188_v23 = vmul.f32 %v2763_v18, %v3301_v29 }
 0x660   :  { %v2765_v50 = vpop.eup %2764  ;;  %2774 = vrsqrt.f32 %v1162_v19  ;;  %v1163_v58 = vadd.f32 1e-05, %v1147_v9  ;;  %v1148_v22 = vmul.f32 0.03125, %v1125_v46 }
 0x661   :  { %v1127_v21 = vpop.xlane.xlu1 %1126  ;;  %v1189_v56 = vmul.f32 %v2765_v50, %v3303_v34  ;;  %v1211_v25 = vmul.f32 %v3431_v43, %v1188_v23 }
 0x662   :  { %v2767_v60 = vpop.eup %2766  ;;  %2776 = vrsqrt.f32 %v1163_v58  ;;  %v1164_v11 = vadd.f32 1e-05, %v1148_v22  ;;  %v1149_v37 = vmul.f32 0.03125, %v1127_v21 }
 0x663   :  { %v1190_v29 = vmul.f32 %v2767_v60, %v3307_v63  ;;  %v1129_v44 = vpop.xlane.xlu0 %1128  ;;  %v1212_v61 = vmul.f32 %v3431_v43, %v1189_v56  ;;  %v1234_v26 = vadd.f32 %v3437_v39, %v1211_v25 }
 0x664   :  { %v2769_v62 = vpop.eup %2768  ;;  %2778 = vrsqrt.f32 %v1164_v11  ;;  %v1165_v12 = vadd.f32 1e-05, %v1149_v37  ;;  %v1150_v55 = vmul.f32 0.03125, %v1129_v44 }
 0x665   :  { %v1213_v48 = vmul.f32 %v3431_v43, %v1190_v29  ;;  %v1191_v34 = vmul.f32 %v2769_v62, %v3313_v32  ;;  %v1131_v33 = vpop.xlane.xlu1 %1130  ;;  %v1235_v20 = vadd.f32 %v3437_v39, %v1212_v61  ;;  %v1250_v28 = vmax.f32 %v1234_v26, 0.0 }
 0x666   :  { %v2771_v24 = vpop.eup %2770  ;;  %2780 = vrsqrt.f32 %v1165_v12  ;;  %v1166_v8 = vadd.f32 1e-05, %v1150_v55  ;;  %v1151_v63 = vmul.f32 0.03125, %v1131_v33 }
 0x667   :  { %v1214_v59 = vmul.f32 %v3431_v43, %v1191_v34  ;;  %v1133_v30 = vpop.xlane.xlu0 %1132  ;;  %v1251_v13 = vmax.f32 %v1235_v20, 0.0  ;;  %v1236_v51 = vadd.f32 %v3437_v39, %v1213_v48  ;;  %v1192_v17 = vmul.f32 %v2771_v24, %v3319_v45 }
 0x668   :  { %v2773_v57 = vpop.eup %2772  ;;  %2782 = vrsqrt.f32 %v1166_v8  ;;  %v1167_v53 = vadd.f32 1e-05, %v1151_v63  ;;  %v1152_v32 = vmul.f32 0.03125, %v1133_v30 }
 0x669   :  { %v1135_v35 = vpop.xlane.xlu1 %1134  ;;  %v1266_v15 = vpack.c.bf16 %v1251_v13, %v1250_v28  ;;  %v1237_v38 = vadd.f32 %v3437_v39, %v1214_v59  ;;  %v1193_v49 = vmul.f32 %v2773_v57, %v3325_v47  ;;  %v1215_v9 = vmul.f32 %v3431_v43, %v1192_v17 }
 0x66a   :  { %v2775_v41 = vpop.eup %2774  ;;  %2784 = vrsqrt.f32 %v1167_v53  ;;  %v1168_v18 = vadd.f32 1e-05, %v1152_v32  ;;  %v1153_v19 = vmul.f32 0.03125, %v1135_v35  ;;  %v1252_v23 = vmax.f32 %v1236_v51, 0.0 }
 0x66b   :  { %2544 = vmatprep.mubr.bf16.mxu0 %v1266_v15  ;;  %v1137_v46 = vpop.xlane.xlu0 %1136  ;;  %v1253_v45 = vmax.f32 %v1237_v38, 0.0  ;;  %v1216_v50 = vmul.f32 %v3431_v43, %v1193_v49  ;;  %v1194_v58 = vmul.f32 %v2775_v41, %v3332_v54  ;;  %v1238_v47 = vadd.f32 %v3437_v39, %v1215_v9 }
 0x66c   :  { %v2777_v22 = vpop.eup %2776  ;;  %2786 = vrsqrt.f32 %v1168_v18  ;;  %v1169_v21 = vadd.f32 1e-05, %v1153_v19  ;;  %v1154_v56 = vmul.f32 0.03125, %v1137_v46 }
 0x66d   :  { %v1139_v25 = vpop.xlane.xlu1 %1138  ;;  %v1267_v60 = vpack.c.bf16 %v1253_v45, %v1252_v23  ;;  %v1239_v11 = vadd.f32 %v3437_v39, %v1216_v50  ;;  %v1195_v37 = vmul.f32 %v2777_v22, %v3339_v0  ;;  %v1217_v29 = vmul.f32 %v3431_v43, %v1194_v58 }
 0x66e   :  { %v2779_v44 = vpop.eup %2778  ;;  %2788 = vrsqrt.f32 %v1169_v21  ;;  %v1170_v61 = vadd.f32 1e-05, %v1154_v56  ;;  %v1155_v26 = vmul.f32 0.03125, %v1139_v25  ;;  %v1254_v62 = vmax.f32 %v1238_v47, 0.0 }
 0x66f   :  { %2545 = vmatmul.mubr.bf16.vlgmr.msra.gmra.mrb[32].mxu0 %v1267_v60  ;;  %v1255_v54 = vmax.f32 %v1239_v11, 0.0  ;;  %v1218_v12 = vmul.f32 %v3431_v43, %v1195_v37  ;;  %v1240_v55 = vadd.f32 %v3437_v39, %v1217_v29  ;;  %v1196_v48 = vmul.f32 %v2779_v44, %v3346_v27 }
 0x670   :  { %v2781_v34 = vpop.eup %2780  ;;  %2790 = vrsqrt.f32 %v1170_v61  ;;  %v1171_v33 = vadd.f32 1e-05, %v1155_v26 }
 0x671   :  { %v1268_v20 = vpack.c.bf16 %v1255_v54, %v1254_v62  ;;  %v1241_v0 = vadd.f32 %v3437_v39, %v1218_v12  ;;  %v1197_v24 = vmul.f32 %v2781_v34, %v3353_v16  ;;  %v1219_v63 = vmul.f32 %v3431_v43, %v1196_v48 }
 0x672   :  { %v2783_v8 = vpop.eup %2782  ;;  %2792 = vrsqrt.f32 %v1171_v33  ;;  %v1256_v28 = vmax.f32 %v1240_v55, 0.0 }
 0x673   :  { %2548 = vmatprep.mubr.bf16.mxu0 %v1268_v20  ;;  %v1257_v59 = vmax.f32 %v1241_v0, 0.0  ;;  %v1220_v30 = vmul.f32 %v3431_v43, %v1197_v24  ;;  %v1198_v13 = vmul.f32 %v2783_v8, %v3360_v14  ;;  %v1242_v51 = vadd.f32 %v3437_v39, %v1219_v63 }
 0x674   :  { %v2785_v27 = vpop.eup %2784 }
 0x675   :  { %v1269_v17 = vpack.c.bf16 %v1257_v59, %v1256_v28  ;;  %v1243_v57 = vadd.f32 %v3437_v39, %v1220_v30  ;;  %v1199_v53 = vmul.f32 %v2785_v27, %v3367_v40  ;;  %v1221_v16 = vmul.f32 %v3431_v43, %v1198_v13 }
 0x676   :  { %v2787_v32 = vpop.eup %2786  ;;  %v1258_v35 = vmax.f32 %v1242_v51, 0.0 }
 0x677   :  { %2549 = vmatmul.mubr.bf16.gmra.mrb[36].mxu0 %v1269_v17  ;;  %v1259_v15 = vmax.f32 %v1243_v57, 0.0  ;;  %v1222_v38 = vmul.f32 %v3431_v43, %v1199_v53  ;;  %v1244_v49 = vadd.f32 %v3437_v39, %v1221_v16  ;;  %v1200_v14 = vmul.f32 %v2787_v32, %v3377_v36  ;;  %v2238_v16 = vld [vmem:[%s3828_s11] ss:$0 sm:$0xff] }
 0x678   :  { %v2789_v41 = vpop.eup %2788 }
 0x679   :  { %v1270_v18 = vpack.c.bf16 %v1259_v15, %v1258_v35  ;;  %v1245_v19 = vadd.f32 %v3437_v39, %v1222_v38  ;;  %v1201_v9 = vmul.f32 %v2789_v41, %v3384_v42  ;;  %v1223_v40 = vmul.f32 %v3431_v43, %v1200_v14 }
 0x67a   :  { %v2791_v46 = vpop.eup %2790  ;;  %v1260_v23 = vmax.f32 %v1244_v49, 0.0 }
 0x67b   :  { %2552 = vmatprep.mubr.bf16.mxu0 %v1270_v18  ;;  %v1261_v45 = vmax.f32 %v1245_v19, 0.0  ;;  %v1224_v50 = vmul.f32 %v3431_v43, %v1201_v9  ;;  %v1202_v58 = vmul.f32 %v2791_v46, %v3394_v31  ;;  %v1246_v21 = vadd.f32 %v3437_v39, %v1223_v40 }
 0x67c   :  { %v2793_v22 = vpop.eup %2792 }
 0x67d   :  { %v1271_v36 = vpack.c.bf16 %v1261_v45, %v1260_v23  ;;  %v1247_v56 = vadd.f32 %v3437_v39, %v1224_v50  ;;  %v1203_v47 = vmul.f32 %v2793_v22, %v3401_v52  ;;  %v1225_v42 = vmul.f32 %v3431_v43, %v1202_v58 }
 0x67e   :  { %v1262_v25 = vmax.f32 %v1246_v21, 0.0 }
 0x67f   :  { %2553 = vmatmul.mubr.bf16.gmra.mrb[40].mxu0 %v1271_v36  ;;  %v1263_v60 = vmax.f32 %v1247_v56, 0.0  ;;  %v1226_v11 = vmul.f32 %v3431_v43, %v1203_v47  ;;  %v1248_v37 = vadd.f32 %v3437_v39, %v1225_v42 }
 0x681   :  { %v1272_v29 = vpack.c.bf16 %v1263_v60, %v1262_v25  ;;  %v1249_v31 = vadd.f32 %v3437_v39, %v1226_v11  ;;  %v1264_v44 = vmax.f32 %v1248_v37, 0.0 }
 0x683   :  { %2556 = vmatprep.mubr.bf16.mxu0 %v1272_v29  ;;  %v1265_v61 = vmax.f32 %v1249_v31, 0.0 }
 0x685   :  { %v1273_v26 = vpack.c.bf16 %v1265_v61, %v1264_v44 }
 0x687   :  { %2557 = vmatmul.mubr.bf16.gmra.mrb[44].mxu0 %v1273_v26 }
 0x742   :  { %v2546_v62 = vpop.f32.mrb[32].mxu0 }
 0x743   :  { %v1372_v54 = vpop.f32.mrb[33].mxu0 }
 0x744   :  { %v2547_v52 = vpop.f32.mrb[34].mxu0 }
 0x745   :  { %v1436_v12 = vpack.c.bf16 %v2547_v52, %v2546_v62  ;;  %v1375_v55 = vpop.f32.mrb[35].mxu0 }
 0x746   :  { %v1435_v48 = vpack.c.bf16 %v1375_v55, %v1372_v54 }
 0x748   :  { %2560 = vmatprep.subr.bf16.mxu1 %v1435_v48 }
 0x749   :  { %2561 = vmatpush3.bf16.msra.mxu1 %v1435_v48 }
 0x74a   :  { %v2550_v34 = vpop.f32.mrb[36].mxu0  ;;  %2562 = vmatprep.subr.bf16.mxu1 %v1436_v12 }
 0x74b   :  { %v1388_v43 = vpop.f32.mrb[37].mxu0 }
 0x74c   :  { %v2551_v33 = vpop.f32.mrb[38].mxu0 }
 0x74d   :  { %v1438_v20 = vpack.c.bf16 %v2551_v33, %v2550_v34  ;;  %v1391_v0 = vpop.f32.mrb[39].mxu0  ;;  %2563 = vmatpush3.bf16.msra.mxu1 %v1436_v12 }
 0x74e   :  { %v1437_v39 = vpack.c.bf16 %v1391_v0, %v1388_v43 }
 0x750   :  { %2564 = vmatprep.subr.bf16.mxu1 %v1437_v39 }
 0x751   :  { %2565 = vmatpush3.bf16.msra.mxu1 %v1437_v39 }
 0x752   :  { %v2554_v24 = vpop.f32.mrb[40].mxu0  ;;  %2566 = vmatprep.subr.bf16.mxu1 %v1438_v20 }
 0x753   :  { %v1404_v8 = vpop.f32.mrb[41].mxu0 }
 0x754   :  { %v2555_v63 = vpop.f32.mrb[42].mxu0 }
 0x755   :  { %v1440_v28 = vpack.c.bf16 %v2555_v63, %v2554_v24  ;;  %v1407_v59 = vpop.f32.mrb[43].mxu0  ;;  %2567 = vmatpush3.bf16.msra.mxu1 %v1438_v20 }
 0x756   :  { %v1439_v30 = vpack.c.bf16 %v1407_v59, %v1404_v8 }
 0x758   :  { %2568 = vmatprep.subr.bf16.mxu1 %v1439_v30 }
 0x759   :  { %2569 = vmatpush3.bf16.msra.mxu1 %v1439_v30 }
 0x75a   :  { %v2558_v13 = vpop.f32.mrb[44].mxu0  ;;  %2570 = vmatprep.subr.bf16.mxu1 %v1440_v28 }
 0x75b   :  { %v1420_v27 = vpop.f32.mrb[45].mxu0 }
 0x75c   :  { %v2559_v51 = vpop.f32.mrb[46].mxu0 }
 0x75d   :  { %v1442_v17 = vpack.c.bf16 %v2559_v51, %v2558_v13  ;;  %v1423_v57 = vpop.f32.mrb[47].mxu0  ;;  %2571 = vmatpush3.bf16.msra.mxu1 %v1440_v28 }
 0x75e   :  { %v1441_v53 = vpack.c.bf16 %v1423_v57, %v1420_v27 }
 0x760   :  { %2572 = vmatprep.subr.bf16.mxu1 %v1441_v53 }
 0x761   :  { %2573 = vmatpush3.bf16.msra.mxu1 %v1441_v53 }
 0x762   :  { %2574 = vmatprep.subr.bf16.mxu1 %v1442_v17 }
 0x765   :  { %2575 = vmatpush3.bf16.msra.mxu1 %v1442_v17 }
 0x768   :  { %2577 = vmatmul.mubr.bf16.vlgmr.msra.gmra.mrb[32].mxu1 %v2948_v1 }
 0x769   :  { %2580 = vmatprep.mubr.bf16.mxu1 %v2953_v2 }
 0x770   :  { %2581 = vmatmul.mubr.bf16.gmra.mrb[36].mxu1 %v2958_v3 }
 0x771   :  { %2584 = vmatprep.mubr.bf16.mxu1 %v2963_v4 }
 0x778   :  { %2585 = vmatmul.mubr.bf16.gmra.mrb[40].mxu1 %v2968_v5 }
 0x779   :  { %2588 = vmatprep.mubr.bf16.mxu1 %v2973_v6 }
 0x780   :  { %2589 = vmatmul.mubr.bf16.gmra.mrb[44].mxu1 %v2978_v7 }
 0x83b   :  { %v2578_v32 = vpop.f32.mrb[32].mxu1 }
 0x83c   :  { %v1484_v35 = vpop.f32.mrb[33].mxu1  ;;  %v1493_v3 = vadd.f32 %v2578_v32, %v2238_v16 }
 0x83d   :  { %v1485_v15 = vadd.f32 %v2238_v16, %v1484_v35  ;;  %v2579_v1 = vpop.f32.mrb[34].mxu1 }
 0x83e   :  { %v1487_v38 = vpop.f32.mrb[35].mxu1  ;;  %v1496_v4 = vadd.f32 %v2579_v1, %v2238_v16 }
 0x83f   :  { %v1488_v2 = vadd.f32 %v2238_v16, %v1487_v38  ;;  %1547 = vadd.xlane.f32.xlu0 %v1485_v15 }
 0x841   :  { %1549 = vadd.xlane.f32.xlu1 %v1488_v2 }
 0x843   :  { %v2582_v49 = vpop.f32.mrb[36].mxu1  ;;  %1551 = vadd.xlane.f32.xlu0 %v1493_v3 }
 0x844   :  { %v1500_v5 = vpop.f32.mrb[37].mxu1  ;;  %v3496_v18 = vadd.f32 %v2582_v49, %v2238_v16 }
 0x845   :  { %v1501_v6 = vadd.f32 %v2238_v16, %v1500_v5  ;;  %v2583_v14 = vpop.f32.mrb[38].mxu1  ;;  %1553 = vadd.xlane.f32.xlu1 %v1496_v4 }
 0x846   :  { %v1503_v7 = vpop.f32.mrb[39].mxu1  ;;  %v3498_v19 = vadd.f32 %v2583_v14, %v2238_v16 }
 0x847   :  { %v1504_v41 = vadd.f32 %v2238_v16, %v1503_v7  ;;  %1555 = vadd.xlane.f32.xlu0 %v1501_v6 }
 0x849   :  { %1557 = vadd.xlane.f32.xlu1 %v1504_v41 }
 0x84b   :  { %v2586_v9 = vpop.f32.mrb[40].mxu1  ;;  %1559 = vadd.xlane.f32.xlu0 %v3496_v18 }
 0x84c   :  { %v1516_v46 = vpop.f32.mrb[41].mxu1  ;;  %v3507_v58 = vadd.f32 %v2586_v9, %v2238_v16 }
 0x84d   :  { %v3501_v40 = vadd.f32 %v2238_v16, %v1516_v46  ;;  %v2587_v23 = vpop.f32.mrb[42].mxu1  ;;  %1561 = vadd.xlane.f32.xlu1 %v3498_v19 }
 0x84e   :  { %v1519_v45 = vpop.f32.mrb[43].mxu1  ;;  %v3510_v22 = vadd.f32 %v2587_v23, %v2238_v16 }
 0x84f   :  { %v3504_v50 = vadd.f32 %v2238_v16, %v1519_v45  ;;  %1563 = vadd.xlane.f32.xlu0 %v3501_v40 }
 0x851   :  { %1565 = vadd.xlane.f32.xlu1 %v3504_v50 }
 0x853   :  { %v2590_v21 = vpop.f32.mrb[44].mxu1  ;;  %1567 = vadd.xlane.f32.xlu0 %v3507_v58 }
 0x854   :  { %v1532_v36 = vpop.f32.mrb[45].mxu1  ;;  %v3519_v60 = vadd.f32 %v2590_v21, %v2238_v16 }
 0x855   :  { %v3513_v56 = vadd.f32 %v2238_v16, %v1532_v36  ;;  %v2591_v47 = vpop.f32.mrb[46].mxu1  ;;  %1569 = vadd.xlane.f32.xlu1 %v3510_v22 }
 0x856   :  { %v1535_v42 = vpop.f32.mrb[47].mxu1  ;;  %v3522_v11 = vadd.f32 %v2591_v47, %v2238_v16 }
 0x857   :  { %v3516_v25 = vadd.f32 %v2238_v16, %v1535_v42  ;;  %1571 = vadd.xlane.f32.xlu0 %v3513_v56 }
 0x859   :  { %1573 = vadd.xlane.f32.xlu1 %v3516_v25 }
 0x85b   :  { %1575 = vadd.xlane.f32.xlu0 %v3519_v60 }
 0x85d   :  { %1577 = vadd.xlane.f32.xlu1 %v3522_v11 }
 0x8cc   :  { %v1548_v37 = vpop.xlane.xlu0 %1547 }
 0x8cd   :  { %v1579_v29 = vmul.f32 0.03125, %v1548_v37 }
 0x8ce   :  { %v1550_v31 = vpop.xlane.xlu1 %1549 }
 0x8cf   :  { %v3526_v44 = vsub.f32 %v1485_v15, %v1579_v29  ;;  %v1580_v61 = vmul.f32 0.03125, %v1550_v31 }
 0x8d0   :  { %v1552_v26 = vpop.xlane.xlu0 %1551 }
 0x8d1   :  { %v3528_v62 = vsub.f32 %v1488_v2, %v1580_v61  ;;  %v1581_v54 = vmul.f32 0.03125, %v1552_v26  ;;  %v1611_v52 = vmul.f32 %v3526_v44, %v3526_v44 }
 0x8d2   :  { %v1554_v12 = vpop.xlane.xlu1 %1553 }
 0x8d3   :  { %v3532_v55 = vsub.f32 %v1493_v3, %v1581_v54  ;;  %v1582_v48 = vmul.f32 0.03125, %v1554_v12  ;;  %v1627_v34 = vsel %vm125_vm0, %v1611_v52, 0.0  ;;  %v1612_v43 = vmul.f32 %v3528_v62, %v3528_v62 }
 0x8d4   :  { %1643 = vadd.xlane.f32.xlu0 %v1627_v34  ;;  %v1556_v33 = vpop.xlane.xlu0 %1555 }
 0x8d5   :  { %v3538_v20 = vsub.f32 %v1496_v4, %v1582_v48  ;;  %v1583_v0 = vmul.f32 0.03125, %v1556_v33  ;;  %v1628_v39 = vsel %vm125_vm0, %v1612_v43, 0.0  ;;  %v1613_v24 = vmul.f32 %v3532_v55, %v3532_v55 }
 0x8d6   :  { %1645 = vadd.xlane.f32.xlu1 %v1628_v39  ;;  %v1558_v8 = vpop.xlane.xlu1 %1557 }
 0x8d7   :  { %v3544_v63 = vsub.f32 %v1501_v6, %v1583_v0  ;;  %v1584_v28 = vmul.f32 0.03125, %v1558_v8  ;;  %v1629_v59 = vsel %vm125_vm0, %v1613_v24, 0.0  ;;  %v1614_v30 = vmul.f32 %v3538_v20, %v3538_v20 }
 0x8d8   :  { %1647 = vadd.xlane.f32.xlu0 %v1629_v59  ;;  %v1560_v13 = vpop.xlane.xlu0 %1559 }
 0x8d9   :  { %v3550_v27 = vsub.f32 %v1504_v41, %v1584_v28  ;;  %v1585_v51 = vmul.f32 0.03125, %v1560_v13  ;;  %v1630_v17 = vsel %vm125_vm0, %v1614_v30, 0.0  ;;  %v1615_v57 = vmul.f32 %v3544_v63, %v3544_v63  ;;  %v2706_v30 = vld [vmem:[%s3834_s17] sm:$0xff]   ;;  %v2710_v13 = vld [vmem:[%s3834_s17 + $0x10] sm:$0xff]  }
 0x8da   :  { %1649 = vadd.xlane.f32.xlu1 %v1630_v17  ;;  %v1562_v53 = vpop.xlane.xlu1 %1561  ;;  %v2714_v17 = vld [vmem:[%s3834_s17 + $0x20] sm:$0xff]  }
 0x8db   :  { %v3557_v16 = vsub.f32 %v3496_v18, %v1585_v51  ;;  %v1586_v32 = vmul.f32 0.03125, %v1562_v53  ;;  %v1631_v35 = vsel %vm125_vm0, %v1615_v57, 0.0  ;;  %v1616_v15 = vmul.f32 %v3550_v27, %v3550_v27  ;;  %v2712_v51 = vld [vmem:[%s3834_s17 + $0x18] sm:$0xff]   ;;  %v2716_v57 = vld [vmem:[%s3834_s17 + $0x28] sm:$0xff]   ;;  %v2718_v53 = vld [vmem:[%s3834_s17 + $0x30] sm:$0xff]  }
 0x8dc   :  { %1651 = vadd.xlane.f32.xlu0 %v1631_v35  ;;  %v1564_v1 = vpop.xlane.xlu0 %1563 }
 0x8dd   :  { %v3564_v38 = vsub.f32 %v3498_v19, %v1586_v32  ;;  %v1587_v2 = vmul.f32 0.03125, %v1564_v1  ;;  %v1632_v3 = vsel %vm125_vm0, %v1616_v15, 0.0  ;;  %v1617_v4 = vmul.f32 %v3557_v16, %v3557_v16  ;;  %v2720_v32 = vld [vmem:[%s3834_s17 + $0x38] sm:$0xff]  }
 0x8de   :  { %1653 = vadd.xlane.f32.xlu1 %v1632_v3  ;;  %v1566_v49 = vpop.xlane.xlu1 %1565 }
 0x8df   :  { %v3571_v5 = vsub.f32 %v3501_v40, %v1587_v2  ;;  %v1588_v6 = vmul.f32 0.03125, %v1566_v49  ;;  %v1633_v14 = vsel %vm125_vm0, %v1617_v4, 0.0  ;;  %v1618_v7 = vmul.f32 %v3564_v38, %v3564_v38 }
 0x8e0   :  { %1655 = vadd.xlane.f32.xlu0 %v1633_v14  ;;  %v1568_v41 = vpop.xlane.xlu0 %1567 }
 0x8e1   :  { %v3578_v18 = vsub.f32 %v3504_v50, %v1588_v6  ;;  %v1589_v19 = vmul.f32 0.03125, %v1568_v41  ;;  %v1634_v9 = vsel %vm125_vm0, %v1618_v7, 0.0  ;;  %v1619_v46 = vmul.f32 %v3571_v5, %v3571_v5 }
 0x8e2   :  { %1657 = vadd.xlane.f32.xlu1 %v1634_v9  ;;  %v1570_v40 = vpop.xlane.xlu1 %1569 }
 0x8e3   :  { %v3585_v23 = vsub.f32 %v3507_v58, %v1589_v19  ;;  %v1590_v45 = vmul.f32 0.03125, %v1570_v40  ;;  %v1635_v21 = vsel %vm125_vm0, %v1619_v46, 0.0  ;;  %v1620_v50 = vmul.f32 %v3578_v18, %v3578_v18 }
 0x8e4   :  { %1659 = vadd.xlane.f32.xlu0 %v1635_v21  ;;  %v1572_v36 = vpop.xlane.xlu0 %1571 }
 0x8e5   :  { %v3592_v47 = vsub.f32 %v3510_v22, %v1590_v45  ;;  %v1591_v42 = vmul.f32 0.03125, %v1572_v36  ;;  %v1636_v37 = vsel %vm125_vm0, %v1620_v50, 0.0  ;;  %v1621_v58 = vmul.f32 %v3585_v23, %v3585_v23 }
 0x8e6   :  { %1661 = vadd.xlane.f32.xlu1 %v1636_v37  ;;  %v1574_v29 = vpop.xlane.xlu1 %1573 }
 0x8e7   :  { %v3599_v31 = vsub.f32 %v3513_v56, %v1591_v42  ;;  %v1592_v61 = vmul.f32 0.03125, %v1574_v29  ;;  %v1637_v26 = vsel %vm125_vm0, %v1621_v58, 0.0  ;;  %v1622_v22 = vmul.f32 %v3592_v47, %v3592_v47 }
 0x8e8   :  { %1663 = vadd.xlane.f32.xlu0 %v1637_v26  ;;  %v1576_v54 = vpop.xlane.xlu0 %1575  ;;  %v3673_v26 = vld [vmem:[%s3829_s12] ss:$0 sm:$0xff] }
 0x8e9   :  { %v3606_v52 = vsub.f32 %v3516_v25, %v1592_v61  ;;  %v1593_v12 = vmul.f32 0.03125, %v1576_v54  ;;  %v1638_v48 = vsel %vm125_vm0, %v1622_v22, 0.0  ;;  %v1623_v56 = vmul.f32 %v3599_v31, %v3599_v31 }
 0x8ea   :  { %1665 = vadd.xlane.f32.xlu1 %v1638_v48  ;;  %v1578_v34 = vpop.xlane.xlu1 %1577 }
 0x8eb   :  { %v3613_v43 = vsub.f32 %v3519_v60, %v1593_v12  ;;  %v1594_v33 = vmul.f32 0.03125, %v1578_v34  ;;  %v1639_v0 = vsel %vm125_vm0, %v1623_v56, 0.0  ;;  %v1624_v25 = vmul.f32 %v3606_v52, %v3606_v52  ;;  %v3679_v34 = vld [vmem:[%s3830_s13] ss:$0 sm:$0xff] }
 0x8ec   :  { %1667 = vadd.xlane.f32.xlu0 %v1639_v0 }
 0x8ed   :  { %v3620_v39 = vsub.f32 %v3522_v11, %v1594_v33  ;;  %v1640_v24 = vsel %vm125_vm0, %v1624_v25, 0.0  ;;  %v1625_v8 = vmul.f32 %v3613_v43, %v3613_v43  ;;  %v2828_v11 = vmov 0.0  }
 0x8ee   :  { %1669 = vadd.xlane.f32.xlu1 %v1640_v24  ;;  %2592 = vmatprep.subr.bf16.mxu0 %v2828_v11 }
 0x8ef   :  { %v1641_v60 = vsel %vm125_vm0, %v1625_v8, 0.0  ;;  %v1626_v28 = vmul.f32 %v3620_v39, %v3620_v39  ;;  %2612 = vmatprep.subr.bf16.mxu1 %v2828_v11  ;;  %2608 = vmatprep.mubr.msk.bf16.mxu0 %vm2829_vm1, %v2828_v11 }
 0x8f0   :  { %1671 = vadd.xlane.f32.xlu0 %v1641_v60  ;;  %2628 = vmatprep.mubr.msk.bf16.mxu1 %vm2829_vm1, %v2828_v11 }
 0x8f1   :  { %v1642_v59 = vsel %vm125_vm0, %v1626_v28, 0.0  ;;  %2613 = vmatpush3.bf16.msra.mxu1 %v2706_v30 }
 0x8f2   :  { %1673 = vadd.xlane.f32.xlu1 %v1642_v59  ;;  %2614 = vmatprep.subr.bf16.mxu1 %v2828_v11 }
 0x8f5   :  { %2615 = vmatpush3.bf16.msra.mxu1 %v2708_v10 }
 0x8f6   :  { %2616 = vmatprep.subr.bf16.mxu1 %v2828_v11 }
 0x8f9   :  { %2617 = vmatpush3.bf16.msra.mxu1 %v2710_v13 }
 0x8fa   :  { %2618 = vmatprep.subr.bf16.mxu1 %v2828_v11 }
 0x8fd   :  { %2619 = vmatpush3.bf16.msra.mxu1 %v2712_v51 }
 0x8fe   :  { %2620 = vmatprep.subr.bf16.mxu1 %v2828_v11 }
 0x901   :  { %2621 = vmatpush3.bf16.msra.mxu1 %v2714_v17 }
 0x902   :  { %2622 = vmatprep.subr.bf16.mxu1 %v2828_v11 }
 0x905   :  { %2623 = vmatpush3.bf16.msra.mxu1 %v2716_v57 }
 0x906   :  { %2624 = vmatprep.subr.bf16.mxu1 %v2828_v11 }
 0x909   :  { %2625 = vmatpush3.bf16.msra.mxu1 %v2718_v53 }
 0x90a   :  { %2626 = vmatprep.subr.bf16.mxu1 %v2828_v11 }
 0x90d   :  { %2627 = vmatpush3.bf16.msra.mxu1 %v2720_v32 }
 0x90e   :  { %2652 = vmatprep.subr.bf16.mxu1 %v2828_v11 }
 0x961   :  { %v1644_v35 = vpop.xlane.xlu0 %1643 }
 0x962   :  { %v1675_v15 = vmul.f32 0.03125, %v1644_v35 }
 0x963   :  { %v1646_v1 = vpop.xlane.xlu1 %1645 }
 0x964   :  { %v1691_v2 = vadd.f32 1e-05, %v1675_v15  ;;  %v1676_v3 = vmul.f32 0.03125, %v1646_v1 }
 0x965   :  { %v1648_v4 = vpop.xlane.xlu0 %1647 }
 0x966   :  { %2794 = vrsqrt.f32 %v1691_v2  ;;  %v1692_v49 = vadd.f32 1e-05, %v1676_v3  ;;  %v1677_v6 = vmul.f32 0.03125, %v1648_v4 }
 0x967   :  { %v1650_v14 = vpop.xlane.xlu1 %1649 }
 0x968   :  { %2796 = vrsqrt.f32 %v1692_v49  ;;  %v1693_v7 = vadd.f32 1e-05, %v1677_v6  ;;  %v1678_v41 = vmul.f32 0.03125, %v1650_v14 }
 0x969   :  { %v1652_v19 = vpop.xlane.xlu0 %1651 }
 0x96a   :  { %2798 = vrsqrt.f32 %v1693_v7  ;;  %v1694_v9 = vadd.f32 1e-05, %v1678_v41  ;;  %v1679_v46 = vmul.f32 0.03125, %v1652_v19 }
 0x96b   :  { %v1654_v40 = vpop.xlane.xlu1 %1653 }
 0x96c   :  { %2800 = vrsqrt.f32 %v1694_v9  ;;  %v1695_v45 = vadd.f32 1e-05, %v1679_v46  ;;  %v1680_v21 = vmul.f32 0.03125, %v1654_v40 }
 0x96d   :  { %v1656_v50 = vpop.xlane.xlu0 %1655 }
 0x96e   :  { %2802 = vrsqrt.f32 %v1695_v45  ;;  %v1696_v36 = vadd.f32 1e-05, %v1680_v21  ;;  %v1681_v42 = vmul.f32 0.03125, %v1656_v50 }
 0x96f   :  { %v1658_v37 = vpop.xlane.xlu1 %1657 }
 0x970   :  { %v2795_v58 = vpop.eup %2794  ;;  %2804 = vrsqrt.f32 %v1696_v36  ;;  %v1697_v29 = vadd.f32 1e-05, %v1681_v42  ;;  %v1682_v61 = vmul.f32 0.03125, %v1658_v37 }
 0x971   :  { %v1723_v22 = vmul.f32 %v2795_v58, %v3526_v44  ;;  %v1660_v54 = vpop.xlane.xlu0 %1659 }
 0x972   :  { %v2797_v12 = vpop.eup %2796  ;;  %2806 = vrsqrt.f32 %v1697_v29  ;;  %v1698_v48 = vadd.f32 1e-05, %v1682_v61  ;;  %v1683_v56 = vmul.f32 0.03125, %v1660_v54 }
 0x973   :  { %v1724_v33 = vmul.f32 %v2797_v12, %v3528_v62  ;;  %v1662_v0 = vpop.xlane.xlu1 %1661  ;;  %v1746_v25 = vmul.f32 %v3673_v26, %v1723_v22 }
 0x974   :  { %v2799_v24 = vpop.eup %2798  ;;  %2808 = vrsqrt.f32 %v1698_v48  ;;  %v1699_v8 = vadd.f32 1e-05, %v1683_v56  ;;  %v1684_v60 = vmul.f32 0.03125, %v1662_v0 }
 0x975   :  { %v1725_v44 = vmul.f32 %v2799_v24, %v3532_v55  ;;  %v1664_v28 = vpop.xlane.xlu0 %1663  ;;  %v1747_v59 = vmul.f32 %v3673_v26, %v1724_v33  ;;  %v1769_v30 = vadd.f32 %v3679_v34, %v1746_v25 }
 0x976   :  { %v2801_v10 = vpop.eup %2800  ;;  %2810 = vrsqrt.f32 %v1699_v8  ;;  %v1700_v13 = vadd.f32 1e-05, %v1684_v60  ;;  %v1685_v51 = vmul.f32 0.03125, %v1664_v28 }
 0x977   :  { %v1726_v62 = vmul.f32 %v2801_v10, %v3538_v20  ;;  %v1666_v17 = vpop.xlane.xlu1 %1665  ;;  %v1770_v57 = vadd.f32 %v3679_v34, %v1747_v59  ;;  %v1748_v53 = vmul.f32 %v3673_v26, %v1725_v44  ;;  %v1785_v15 = vmax.f32 %v1769_v30, 0.0 }
 0x978   :  { %v2803_v32 = vpop.eup %2802  ;;  %2812 = vrsqrt.f32 %v1700_v13  ;;  %v1701_v35 = vadd.f32 1e-05, %v1685_v51  ;;  %v1686_v55 = vmul.f32 0.03125, %v1666_v17 }
 0x979   :  { %v1727_v1 = vmul.f32 %v2803_v32, %v3544_v63  ;;  %v1668_v2 = vpop.xlane.xlu0 %1667  ;;  %v1786_v3 = vmax.f32 %v1770_v57, 0.0  ;;  %v1749_v4 = vmul.f32 %v3673_v26, %v1726_v62  ;;  %v1771_v49 = vadd.f32 %v3679_v34, %v1748_v53 }
 0x97a   :  { %v2805_v6 = vpop.eup %2804  ;;  %2814 = vrsqrt.f32 %v1701_v35  ;;  %v1702_v20 = vadd.f32 1e-05, %v1686_v55  ;;  %v1687_v14 = vmul.f32 0.03125, %v1668_v2 }
 0x97b   :  { %v1728_v7 = vmul.f32 %v2805_v6, %v3550_v27  ;;  %v1670_v41 = vpop.xlane.xlu1 %1669  ;;  %v1801_v19 = vpack.c.bf16 %v1786_v3, %v1785_v15  ;;  %v1772_v9 = vadd.f32 %v3679_v34, %v1749_v4  ;;  %v1750_v45 = vmul.f32 %v3673_v26, %v1727_v1 }
 0x97c   :  { %v2807_v46 = vpop.eup %2806  ;;  %2816 = vrsqrt.f32 %v1702_v20  ;;  %v1703_v40 = vadd.f32 1e-05, %v1687_v14  ;;  %v1688_v63 = vmul.f32 0.03125, %v1670_v41  ;;  %v1787_v36 = vmax.f32 %v1771_v49, 0.0 }
 0x97d   :  { %v1729_v21 = vmul.f32 %v2807_v46, %v3557_v16  ;;  %2593 = vmatpush3.bf16.msra.mxu0 %v1801_v19  ;;  %v1672_v50 = vpop.xlane.xlu0 %1671  ;;  %v1788_v42 = vmax.f32 %v1772_v9, 0.0  ;;  %v1751_v37 = vmul.f32 %v3673_v26, %v1728_v7  ;;  %v1773_v61 = vadd.f32 %v3679_v34, %v1750_v45 }
 0x97e   :  { %v2809_v58 = vpop.eup %2808  ;;  %2818 = vrsqrt.f32 %v1703_v40  ;;  %v1704_v27 = vadd.f32 1e-05, %v1688_v63  ;;  %v1689_v29 = vmul.f32 0.03125, %v1672_v50  ;;  %2594 = vmatprep.subr.bf16.mxu0 %v2828_v11 }
 0x97f   :  { %v1730_v22 = vmul.f32 %v2809_v58, %v3564_v38  ;;  %v1674_v54 = vpop.xlane.xlu1 %1673  ;;  %v1802_v12 = vpack.c.bf16 %v1788_v42, %v1787_v36  ;;  %v1774_v16 = vadd.f32 %v3679_v34, %v1751_v37  ;;  %v1752_v48 = vmul.f32 %v3673_v26, %v1729_v21 }
 0x980   :  { %v2811_v56 = vpop.eup %2810  ;;  %2820 = vrsqrt.f32 %v1704_v27  ;;  %v1705_v33 = vadd.f32 1e-05, %v1689_v29  ;;  %v1690_v0 = vmul.f32 0.03125, %v1674_v54  ;;  %v1789_v25 = vmax.f32 %v1773_v61, 0.0  ;;  %v2711_v54 = vld [vmem:[%s3833_s16 + $0x10] sm:$0xff]  }
 0x981   :  { %v1731_v24 = vmul.f32 %v2811_v56, %v3571_v5  ;;  %2595 = vmatpush3.bf16.msra.mxu0 %v1802_v12  ;;  %v1790_v8 = vmax.f32 %v1774_v16, 0.0  ;;  %v1753_v60 = vmul.f32 %v3673_v26, %v1730_v22  ;;  %v1775_v44 = vadd.f32 %v3679_v34, %v1752_v48  ;;  %v1809_v22 = vld [vmem:[%s3831_s14] sm:$0xf]  ;;  %v2713_v12 = vld [vmem:[%s3833_s16 + $0x18] sm:$0xff]   ;;  %v2717_v48 = vld [vmem:[%s3833_s16 + $0x28] sm:$0xff]  }
 0x982   :  { %v2813_v38 = vpop.eup %2812  ;;  %2822 = vrsqrt.f32 %v1705_v33  ;;  %v1706_v28 = vadd.f32 1e-05, %v1690_v0  ;;  %2596 = vmatprep.subr.bf16.mxu0 %v2828_v11  ;;  %v2715_v16 = vld [vmem:[%s3833_s16 + $0x20] sm:$0xff]   ;;  %v2719_v56 = vld [vmem:[%s3833_s16 + $0x30] sm:$0xff]   ;;  %v2721_v33 = vld [vmem:[%s3833_s16 + $0x38] sm:$0xff]  }
 0x983   :  { %v1732_v59 = vmul.f32 %v2813_v38, %v3578_v18  ;;  %v1803_v30 = vpack.c.bf16 %v1790_v8, %v1789_v25  ;;  %v1776_v10 = vadd.f32 %v3679_v34, %v1753_v60  ;;  %v1754_v5 = vmul.f32 %v3673_v26, %v1731_v24  ;;  %v1867_v0 = vld [vmem:[%s3832_s15] sm:$0xf]  ;;  %v2723_v24 = vld [vmem:[%s3836_s19 + $0x8] sm:$0xff]   ;;  %v2724_v8 = vld [vmem:[%s3836_s19 + $0x10] sm:$0xff]  }
 0x984   :  { %v2815_v13 = vpop.eup %2814  ;;  %2824 = vrsqrt.f32 %v1706_v28  ;;  %v1791_v62 = vmax.f32 %v1775_v44, 0.0  ;;  %2629 = vmatmul.mubr.bf16.vlgmr.msra.gmra.mrb[48].mxu1 %v1867_v0  ;;  %v2722_v25 = vld [vmem:[%s3836_s19] sm:$0xff]   ;;  %v2725_v60 = vld [vmem:[%s3836_s19 + $0x18] sm:$0xff]   ;;  %v2727_v38 = vld [vmem:[%s3836_s19 + $0x28] sm:$0xff]  }
 0x985   :  { %v1733_v51 = vmul.f32 %v2815_v13, %v3585_v23  ;;  %2597 = vmatpush3.bf16.msra.mxu0 %v1803_v30  ;;  %v1792_v17 = vmax.f32 %v1776_v10, 0.0  ;;  %v1755_v57 = vmul.f32 %v3673_v26, %v1732_v59  ;;  %v1777_v32 = vadd.f32 %v3679_v34, %v1754_v5  ;;  %2668 = vmatprep.mubr.msk.bf16.mxu1 %vm2829_vm1, %v2828_v11  ;;  %v2726_v44 = vld [vmem:[%s3836_s19 + $0x20] sm:$0xff]  }
 0x986   :  { %v2817_v53 = vpop.eup %2816  ;;  %2598 = vmatprep.subr.bf16.mxu0 %v2828_v11  ;;  %2653 = vmatpush3.bf16.msra.mxu1 %v2722_v25 }
 0x987   :  { %v1734_v18 = vmul.f32 %v2817_v53, %v3592_v47  ;;  %v1804_v35 = vpack.c.bf16 %v1792_v17, %v1791_v62  ;;  %v1778_v55 = vadd.f32 %v3679_v34, %v1755_v57  ;;  %v1756_v15 = vmul.f32 %v3673_v26, %v1733_v51  ;;  %2654 = vmatprep.subr.bf16.mxu1 %v2828_v11  ;;  %v2728_v57 = vld [vmem:[%s3836_s19 + $0x30] sm:$0xff]   ;;  %v2729_v53 = vld [vmem:[%s3836_s19 + $0x38] sm:$0xff]  }
 0x988   :  { %v2819_v1 = vpop.eup %2818  ;;  %v1793_v2 = vmax.f32 %v1777_v32, 0.0 }
 0x989   :  { %v1735_v23 = vmul.f32 %v2819_v1, %v3599_v31  ;;  %2599 = vmatpush3.bf16.msra.mxu0 %v1804_v35  ;;  %v1794_v3 = vmax.f32 %v1778_v55, 0.0  ;;  %v1757_v4 = vmul.f32 %v3673_v26, %v1734_v18  ;;  %v1779_v49 = vadd.f32 %v3679_v34, %v1756_v15  ;;  %v2257_v18 = vld [vmem:[%s3835_s18] ss:$0 sm:$0xff] }
 0x98a   :  { %v2821_v6 = vpop.eup %2820  ;;  %2600 = vmatprep.subr.bf16.mxu0 %v2828_v11  ;;  %2655 = vmatpush3.bf16.msra.mxu1 %v2723_v24 }
 0x98b   :  { %v1736_v47 = vmul.f32 %v2821_v6, %v3606_v52  ;;  %v1805_v20 = vpack.c.bf16 %v1794_v3, %v1793_v2  ;;  %v1780_v14 = vadd.f32 %v3679_v34, %v1757_v4  ;;  %v1758_v41 = vmul.f32 %v3673_v26, %v1735_v23  ;;  %2656 = vmatprep.subr.bf16.mxu1 %v2828_v11 }
 0x98c   :  { %v2823_v7 = vpop.eup %2822  ;;  %v1795_v31 = vmax.f32 %v1779_v49, 0.0 }
 0x98d   :  { %v1737_v19 = vmul.f32 %v2823_v7, %v3613_v43  ;;  %2601 = vmatpush3.bf16.msra.mxu0 %v1805_v20  ;;  %v1796_v9 = vmax.f32 %v1780_v14, 0.0  ;;  %v1759_v46 = vmul.f32 %v3673_v26, %v1736_v47  ;;  %v1781_v63 = vadd.f32 %v3679_v34, %v1758_v41 }
 0x98e   :  { %v2825_v40 = vpop.eup %2824  ;;  %2602 = vmatprep.subr.bf16.mxu0 %v2828_v11  ;;  %2657 = vmatpush3.bf16.msra.mxu1 %v2724_v8 }
 0x98f   :  { %v1738_v52 = vmul.f32 %v2825_v40, %v3620_v39  ;;  %v1806_v45 = vpack.c.bf16 %v1796_v9, %v1795_v31  ;;  %v1782_v21 = vadd.f32 %v3679_v34, %v1759_v46  ;;  %v1760_v50 = vmul.f32 %v3673_v26, %v1737_v19  ;;  %2658 = vmatprep.subr.bf16.mxu1 %v2828_v11 }
 0x990   :  { %v1797_v36 = vmax.f32 %v1781_v63, 0.0 }
 0x991   :  { %2603 = vmatpush3.bf16.msra.mxu0 %v1806_v45  ;;  %v1798_v43 = vmax.f32 %v1782_v21, 0.0  ;;  %v1761_v42 = vmul.f32 %v3673_v26, %v1738_v52  ;;  %v1783_v37 = vadd.f32 %v3679_v34, %v1760_v50  ;;  %v2707_v26 = vld [vmem:[%s3833_s16] sm:$0xff]  }
 0x992   :  { %2604 = vmatprep.subr.bf16.mxu0 %v2828_v11  ;;  %2659 = vmatpush3.bf16.msra.mxu1 %v2725_v60 }
 0x993   :  { %v1807_v58 = vpack.c.bf16 %v1798_v43, %v1797_v36  ;;  %v1784_v27 = vadd.f32 %v3679_v34, %v1761_v42  ;;  %v1799_v29 = vmax.f32 %v1783_v37, 0.0  ;;  %v2709_v34 = vld [vmem:[%s3833_s16 + $0x8] sm:$0xff]   ;;  %2660 = vmatprep.subr.bf16.mxu1 %v2828_v11 }
 0x995   :  { %2605 = vmatpush3.bf16.msra.mxu0 %v1807_v58  ;;  %v1800_v39 = vmax.f32 %v1784_v27, 0.0 }
 0x996   :  { %2606 = vmatprep.subr.bf16.mxu0 %v2828_v11  ;;  %2661 = vmatpush3.bf16.msra.mxu1 %v2726_v44 }
 0x997   :  { %v1808_v61 = vpack.c.bf16 %v1800_v39, %v1799_v29  ;;  %2662 = vmatprep.subr.bf16.mxu1 %v2828_v11 }
 0x999   :  { %2607 = vmatpush3.bf16.msra.mxu0 %v1808_v61 }
 0x99a   :  { %2632 = vmatprep.subr.bf16.mxu0 %v2828_v11  ;;  %2663 = vmatpush3.bf16.msra.mxu1 %v2727_v38 }
 0x99b   :  { %2664 = vmatprep.subr.bf16.mxu1 %v2828_v11 }
 0x99c   :  { %2609 = vmatmul.mubr.bf16.vlgmr.msra.gmra.mrb[48].mxu0 %v1809_v22 }
 0x99d   :  { %2633 = vmatpush3.bf16.msra.mxu0 %v2707_v26  ;;  %2648 = vmatprep.mubr.msk.bf16.mxu0 %vm2829_vm1, %v2828_v11 }
 0x99e   :  { %2634 = vmatprep.subr.bf16.mxu0 %v2828_v11  ;;  %2665 = vmatpush3.bf16.msra.mxu1 %v2728_v57 }
 0x99f   :  { %2666 = vmatprep.subr.bf16.mxu1 %v2828_v11 }
 0x9a1   :  { %2635 = vmatpush3.bf16.msra.mxu0 %v2709_v34 }
 0x9a2   :  { %2636 = vmatprep.subr.bf16.mxu0 %v2828_v11  ;;  %2667 = vmatpush3.bf16.msra.mxu1 %v2729_v53 }
 0x9a5   :  { %2637 = vmatpush3.bf16.msra.mxu0 %v2711_v54 }
 0x9a6   :  { %2638 = vmatprep.subr.bf16.mxu0 %v2828_v11 }
 0x9a9   :  { %2639 = vmatpush3.bf16.msra.mxu0 %v2713_v12 }
 0x9aa   :  { %2640 = vmatprep.subr.bf16.mxu0 %v2828_v11 }
 0x9ad   :  { %2641 = vmatpush3.bf16.msra.mxu0 %v2715_v16 }
 0x9ae   :  { %2642 = vmatprep.subr.bf16.mxu0 %v2828_v11 }
 0x9b1   :  { %2643 = vmatpush3.bf16.msra.mxu0 %v2717_v48 }
 0x9b2   :  { %2644 = vmatprep.subr.bf16.mxu0 %v2828_v11 }
 0x9b5   :  { %2645 = vmatpush3.bf16.msra.mxu0 %v2719_v56 }
 0x9b6   :  { %2646 = vmatprep.subr.bf16.mxu0 %v2828_v11  ;;  %v2258_v11 = vld [vmem:[%s3837_s20] ss:$0 sm:$0xff] }
 0x9b9   :  { %2647 = vmatpush3.bf16.msra.mxu0 %v2721_v33 }
 0xa57   :  { %v1966_v5 = vpop.f32.mrb[48].mxu1 }
 0xa58   :  { %v2630_v51 = vpop.f32.mrb[49].mxu1 }
 0xa59   :  { %v1969_v62 = vpop.f32.mrb[50].mxu1 }
 0xa5a   :  { %v2631_v17 = vpop.f32.mrb[51].mxu1 }
 0xa6f   :  { %v1844_v28 = vpop.f32.mrb[48].mxu0 }
 0xa70   :  { %v1850_v59 = vpack.c.bf16 %v1844_v28, %v1844_v28  ;;  %v2610_v30 = vpop.f32.mrb[49].mxu0 }
 0xa71   :  { %v1847_v10 = vpop.f32.mrb[50].mxu0 }
 0xa72   :  { %v2611_v13 = vpop.f32.mrb[51].mxu0  ;;  %2649 = vmatmul.mubr.bf16.vlgmr.msra.gmra.mrb[52].mxu0 %v1850_v59 }
 0xb45   :  { %v2054_v32 = vpop.f32.mrb[52].mxu0 }
 0xb46   :  { %v2055_v35 = vadd.f32 %v2054_v32, %v1966_v5  ;;  %v2650_v55 = vpop.f32.mrb[53].mxu0 }
 0xb47   :  { %v2057_v15 = vpop.f32.mrb[54].mxu0 }
 0xb48   :  { %v2067_v1 = vadd.f32 %v2257_v18, %v2055_v35  ;;  %v2651_v2 = vpop.f32.mrb[55].mxu0 }
 0xb4a   :  { %v2068_v23 = vmax.f32 %v2067_v1, 0.0 }
 0xb4c   :  { %v2069_v3 = vpack.c.bf16 %v2068_v23, %v2068_v23 }
 0xb4e   :  { %2669 = vmatmul.mubr.bf16.vlgmr.msra.gmra.mrb[52].mxu1 %v2069_v3 }
 0xc21   :  { %v2175_v4 = vpop.f32.mrb[52].mxu1 }
 0xc22   :  { %v2176_v49 = vadd.f32 %v2258_v11, %v2175_v4  ;;  %v2670_v6 = vpop.f32.mrb[53].mxu1 }
 0xc23   :  { %v2178_v47 = vpop.f32.mrb[54].mxu1 }
 0xc24   :  { %2181 = vst [vmem:[%s3838_s21] sm:$0xff] %v2176_v49  ;;  %v2671_v20 = vpop.f32.mrb[55].mxu1 }
 0xc25   :  { %2186 = vsyncmov [#allocation3] }
 0xc28   :  { %s2187_s18 = vpop.sfrf %2186 }
 0xc29   :  { %p2267_p0 = scmp.ne.s32.totalorder %s2187_s18, 0 }
 0xc2b   :  { %2191 = shalt.err (%p2267_p0)  }

</bundles_post_ra>
